<compile_context>
chip_gen: v7x
topology: tpu7x:2x2x1
jax: 0.10.0
libtpu: 0.0.40
codegen_flags: <defaults>
</compile_context>

<pallas_src>
import functools

import jax
import jax.numpy as jnp
from jax import lax
from jax.experimental import pallas as pl
from jax.experimental.pallas import tpu as pltpu

EPS = 1e-20
TEMP = 0.07          # args.temp default
MAP_SCALE = 8        # synthetic encoder stride
ENC_HID_DIM = 32     # synthetic encoder output channels
HEAD_OUT = 128       # selfsim_fc output dim (fixed in make_head)

_VMEM_LIMIT = 32 * 1024 * 1024   # raise v5e's 16 MiB scoped default; safe on v6e/v7x


# ----------------------------------------------------------------------------
# Kernel A: encoder (patch-embed conv) + ReLU + spatial mean pool
#           + selfsim_fc Linear + L2 normalize, all fused.
# ----------------------------------------------------------------------------
def encoder_head_kernel(p_ref, we_ref, be_ref, wf_ref, bf_ref, o_ref, *,
                        hw, node_tile):
    tile_rows = node_tile * hw

    # Patch-embed conv + ReLU: bf16 inputs, f32 accumulation on the MXU.
    h = jnp.dot(p_ref[...], we_ref[...], preferred_element_type=jnp.float32)
    h = jnp.maximum(h + be_ref[...], 0.0)

    # Spatial average pool (maps.sum(-1).sum(-1) / (H*W)) as an MXU matmul with
    # a block-diagonal pooling matrix generated in-kernel (deterministic, so no
    # HBM input / DMA / extra double-buffered VMEM).  No integer divide:
    # col // hw == row  <=>  0 <= col - row*hw < hw.
    r = lax.broadcasted_iota(jnp.int32, (node_tile, tile_rows), 0)
    c = lax.broadcasted_iota(jnp.int32, (node_tile, tile_rows), 1)
    d = c - r * hw
    pool = jnp.where((d >= 0) & (d < hw), 1.0 / hw, 0.0)
    feat = jnp.dot(pool, h, preferred_element_type=jnp.float32)

    # selfsim_fc Linear + F.normalize(p=2): rsqrt on the EUP, no vector divide.
    y = jnp.dot(feat, wf_ref[...], preferred_element_type=jnp.float32) + bf_ref[...]
    ss = jnp.sum(y * y, axis=-1, keepdims=True)
    o_ref[...] = y * lax.rsqrt(jnp.maximum(ss, 1e-24))


def _choose_node_tile(n_nodes, hw, patch_dim, *,
                      max_rows=2048, max_pool_elems=256 * 1024,
                      vmem_budget=8 * 1024 * 1024):
    """Pick the node tile (rows of the (nodes,128) output) for Kernel A.

    Constraints:
      * node_tile multiple of 8 (sublane alignment of the output block),
      * >=2 grid steps whenever n_nodes >= 16 (keep both v7x TensorCores busy),
      * patch-row tile <= max_rows (HBM roofline saturates ~512+ rows,
        diminishing returns past ~1-2k rows),
      * in-kernel pool matrix stays small (cheap per-step regeneration),
      * double-buffered tiles + intermediates fit a conservative VMEM budget
        (v5e scoped default is 16 MiB; we also raise the limit to 32 MiB).
    Non-divisible node counts are handled by padding, never by a single
    whole-array block (the old fallback was a VMEM cliff at real resolutions).
    """
    def vmem_bytes(d):
        rows = d * hw
        return (2 * rows * patch_dim * 2            # bf16 patch tiles, double-buffered
                + rows * ENC_HID_DIM * 4            # conv activations
                + d * rows * 4                      # in-kernel pool matrix
                + d * ENC_HID_DIM * 4               # pooled feats
                + 2 * d * HEAD_OUT * 4              # output tiles, double-buffered
                + 2 * patch_dim * ENC_HID_DIM * 2   # bf16 weights (2 buffers)
                + 2 * ENC_HID_DIM * HEAD_OUT * 4)   # fc weights (2 buffers)

    if n_nodes >= 16:
        upper = max(8, (((n_nodes + 1) // 2) // 8) * 8)   # leaves >= 2 grid steps
    else:
        upper = 8

    best = 8
    for d in range(8, upper + 1, 8):
        if (d * hw <= max_rows
                and d * d * hw <= max_pool_elems
                and vmem_bytes(d) <= vmem_budget):
            best = d
    return best


def encode_project(patches_bf16, params, *, n_nodes, hw):
    _, k = patches_bf16.shape
    c_enc = params["w_enc"].shape[1]
    c_out = params["w_fc"].shape[1]

    node_tile = _choose_node_tile(n_nodes, hw, k)
    tile_rows = node_tile * hw
    n_steps = -(-n_nodes // node_tile)
    n_pad = n_steps * node_tile
    if n_pad != n_nodes:                      # pad to full tiles; padded rows sliced off
        patches_bf16 = jnp.pad(patches_bf16, ((0, (n_pad - n_nodes) * hw), (0, 0)))

    kernel = functools.partial(encoder_head_kernel, hw=hw, node_tile=node_tile)
    out = pl.pallas_call(
        kernel,
        out_shape=jax.ShapeDtypeStruct((n_pad, c_out), jnp.float32),
        grid=(n_steps,),
        in_specs=[
            pl.BlockSpec((tile_rows, k), lambda i: (i, 0)),
            pl.BlockSpec((k, c_enc), lambda i: (0, 0)),
            pl.BlockSpec((1, c_enc), lambda i: (0, 0)),
            pl.BlockSpec((c_enc, c_out), lambda i: (0, 0)),
            pl.BlockSpec((1, c_out), lambda i: (0, 0)),
        ],
        out_specs=pl.BlockSpec((node_tile, c_out), lambda i: (i, 0)),
        compiler_params=pltpu.CompilerParams(
            dimension_semantics=("parallel",),
            vmem_limit_bytes=_VMEM_LIMIT),
    )(patches_bf16,
      params["w_enc"].astype(jnp.bfloat16), params["b_enc"],
      params["w_fc"], params["b_fc"])
    return out[:n_nodes] if n_pad != n_nodes else out


# ----------------------------------------------------------------------------
# Kernel B: per-step (several batch elements) affinity + stoch_mat (both
#           directions via transpose reuse) + palindrome walk chain
#           (prefix-product reuse) + cycle cross-entropy & accuracy.
# ----------------------------------------------------------------------------
def walk_xent_kernel(q_ref, loss_ref, corr_ref, *, temp, n_frames, n_nodes,
                     bpg, batch, mask_tail):
    # q_ref: (bpg, T, N, C) node embeddings; loss_ref/corr_ref: (1, T-2) sums.
    T, N = n_frames, n_nodes
    n_walks = T - 2
    inv_t = 1.0 / temp

    row = lax.broadcasted_iota(jnp.int32, (N, N), 0)
    col = lax.broadcasted_iota(jnp.int32, (N, N), 1)
    eye = (row == col).astype(jnp.float32)
    tgt = lax.broadcasted_iota(jnp.int32, (N, 1), 0)
    dims_nt = (((1,), (1,)), ((), ()))             # contract channels: A @ B.T

    def stoch(a):                                  # F.softmax(a / temp, dim=-1)
        a = a * inv_t
        m = jnp.max(a, axis=-1, keepdims=True)
        e = jnp.exp(a - m)
        return e * pl.reciprocal(jnp.sum(e, axis=-1, keepdims=True), approx=True)

    step = pl.program_id(0)
    loss_acc = [jnp.zeros((1, 1), jnp.float32) for _ in range(n_walks)]
    corr_acc = [jnp.zeros((1, 1), jnp.float32) for _ in range(n_walks)]

    for ib in range(bpg):                          # unrolled; amortizes per-step overhead
        if mask_tail:                              # zero-padded batch tail, mask it out
            valid = (step * bpg + ib < batch).astype(jnp.float32)
        else:
            valid = 1.0
        qs = [q_ref[ib, t] for t in range(T)]      # T x (N, C), loaded once per element

        a12, a21 = [], []
        for t in range(T - 1):
            raw = lax.dot_general(qs[t], qs[t + 1], dims_nt,
                                  preferred_element_type=jnp.float32)
            a12.append(stoch(raw))                 # forward stochastic matrix
            a21.append(stoch(raw.T))               # reverse: reuse transpose, no 2nd dot

        left, right = a12[0], a21[0]               # reused prefix products
        for i in range(1, T - 1):
            left = jnp.dot(left, a12[i], preferred_element_type=jnp.float32)
            right = jnp.dot(a21[i], right, preferred_element_type=jnp.float32)
            aa = jnp.dot(left, right, preferred_element_type=jnp.float32)

            # CrossEntropyLoss(log(aa + EPS), target=arange(N)) per row.
            logits = jnp.log(aa + EPS)
            m = jnp.max(logits, axis=-1, keepdims=True)
            lse = m + jnp.log(jnp.sum(jnp.exp(logits - m), axis=-1, keepdims=True))
            diag = jnp.sum(logits * eye, axis=-1, keepdims=True)
            row_loss = lse - diag                                        # (N, 1)

            first_max = jnp.min(jnp.where(logits >= m, col, N), axis=-1, keepdims=True)
            row_corr = (first_max == tgt).astype(jnp.float32)            # (N, 1)

            loss_acc[i - 1] = loss_acc[i - 1] + valid * jnp.sum(row_loss, axis=0, keepdims=True)
            corr_acc[i - 1] = corr_acc[i - 1] + valid * jnp.sum(row_corr, axis=0, keepdims=True)

    loss_ref[...] = jnp.concatenate(loss_acc, axis=-1)                   # (1, T-2)
    corr_ref[...] = jnp.concatenate(corr_acc, axis=-1)


def walk_loss_sums(q_btnc, temp):
    B, T, N, C = q_btnc.shape
    n_walks = T - 2
    # >=2 grid steps whenever B >= 2 (both v7x TensorCores), several batch
    # elements per step when B is large to amortize the ~0.35us/step overhead.
    bpg = min(8, max(1, (B + 1) // 2))
    n_steps = -(-B // bpg)
    b_pad = n_steps * bpg
    if b_pad != B:
        q_btnc = jnp.pad(q_btnc, ((0, b_pad - B), (0, 0), (0, 0), (0, 0)))

    kernel = functools.partial(walk_xent_kernel, temp=temp, n_frames=T,
                               n_nodes=N, bpg=bpg, batch=B,
                               mask_tail=(b_pad != B))
    out_spec = pl.BlockSpec((None, 1, n_walks), lambda s: (s, 0, 0))
    return pl.pallas_call(
        kernel,
        out_shape=(jax.ShapeDtypeStruct((n_steps, 1, n_walks), jnp.float32),
                   jax.ShapeDtypeStruct((n_steps, 1, n_walks), jnp.float32)),
        grid=(n_steps,),
        in_specs=[pl.BlockSpec((bpg, T, N, C), lambda s: (s, 0, 0, 0))],
        out_specs=(out_spec, out_spec),
        compiler_params=pltpu.CompilerParams(
            dimension_semantics=("parallel",)),
    )(q_btnc)


# ----------------------------------------------------------------------------
# Forward pass (glue: reshapes / transposes only; all math in the two kernels)
# ----------------------------------------------------------------------------
def crw_forward(x, params):
    """x: (B, T, N*3, H, W) float32.  Returns (q, loss, diags) like CRW.forward."""
    B, T, NC, H, W = x.shape
    N = NC // 3
    ms = MAP_SCALE
    Hf, Wf = H // ms, W // ms
    HWf = Hf * Wf

    # x.transpose(1, 2).view(B, N, 3, T, H, W) + im2col for the patch-embed conv.
    # Cast to bf16 FIRST so the extra HBM pass over the largest tensor is half
    # size (the conv matmul still accumulates in f32 inside the kernel).
    # TODO(synk): fold the im2col rearrangement into Kernel A (BlockSpec over
    #             (b,t,n) blocks of x) to remove this extra HBM pass entirely.
    x_bf = x.astype(jnp.bfloat16)
    x8 = x_bf.reshape(B, T, N, 3, Hf, ms, Wf, ms)
    p = jnp.transpose(x8, (0, 1, 2, 4, 6, 3, 5, 7))        # (B,T,N,Hf,Wf,3,ms,ms)
    patches = p.reshape(B * T * N * HWf, 3 * ms * ms)

    # ---- pixels_to_nodes: encoder + pool + selfsim_fc + L2 normalize (1 kernel)
    q_rows = encode_project(patches, params, n_nodes=B * T * N, hw=HWf)  # (BTN,128)
    q_btnc = q_rows.reshape(B, T, N, HEAD_OUT)
    q = jnp.transpose(q_btnc, (0, 3, 1, 2))                # (B, C, T, N), module's q

    # ---- affinity + stoch_mat + palindrome walks + cycle xent (1 kernel)
    diags = {}
    n_walks = T - 2
    if n_walks > 0:
        loss_sums, corr_sums = walk_loss_sums(q_btnc, TEMP)      # (steps, 1, n_walks)
        denom = jnp.float32(B * N)
        loss_per_walk = jnp.sum(loss_sums, axis=(0, 1)) / denom  # (n_walks,)
        acc_per_walk = jnp.sum(corr_sums, axis=(0, 1)) / denom
        losses = []
        for i in range(1, T - 1):
            li = loss_per_walk[i - 1]
            diags[f"{H} xent cyc r{i}"] = li
            diags[f"{H} acc cyc r{i}"] = acc_per_walk[i - 1]
            losses.append(li)
        loss = jnp.reshape(sum(losses) / max(1, len(losses)), (1,))  # torch shape (1,)
    else:
        loss = jnp.zeros((1,), jnp.float32)
    return q, loss, diags


def init_params(key):
    k1, k2 = jax.random.split(key)
    patch_dim = 3 * MAP_SCALE * MAP_SCALE
    return {
        "w_enc": 0.05 * jax.random.normal(k1, (patch_dim, ENC_HID_DIM), jnp.float32),
        "b_enc": jnp.zeros((1, ENC_HID_DIM), jnp.float32),
        "w_fc": 0.1 * jax.random.normal(k2, (ENC_HID_DIM, HEAD_OUT), jnp.float32),
        "b_fc": jnp.zeros((1, HEAD_OUT), jnp.float32),
    }


if __name__ == "__main__":
    key = jax.random.PRNGKey(0)
    kx, kp = jax.random.split(key)

    B, T, Npatch, H, W = 2, 4, 8, 16, 16          # N=8 patches of 16x16, 3 channels each
    x = jax.random.normal(kx, (B, T, Npatch * 3, H, W), jnp.float32)
    params = init_params(kp)

    q, loss, diags = jax.jit(crw_forward)(x, params)
    jax.block_until_ready((q, loss, diags))

    assert q.shape == (B, HEAD_OUT, T, Npatch)
    assert loss.shape == (1,)
    assert len(diags) == 2 * (T - 2)
    print("KERNEL_OK")
</pallas_src>

<mosaic_0001>
module attributes {stable_mosaic.version = 11 : i64} {
  func.func @encoder_head_kernel(%arg0: i32, %arg1: memref<128x192xbf16, #tpu.memory_space<vmem>>, %arg2: memref<192x32xbf16, #tpu.memory_space<vmem>>, %arg3: memref<1x32xf32, #tpu.memory_space<vmem>>, %arg4: memref<32x128xf32, #tpu.memory_space<vmem>>, %arg5: memref<1x128xf32, #tpu.memory_space<vmem>>, %arg6: memref<32x128xf32, #tpu.memory_space<vmem>>) attributes {dimension_semantics = [#tpu.dimension_semantics<parallel>], iteration_bounds = array<i64: 2>, scalar_prefetch = 0 : i64, scratch_operands = 0 : i64, tpu.core_type = #tpu.core_type<tc>, window_params = [{transform_indices = @transform_0, window_bounds = array<i64: 128, 192>}, {pipeline_mode = #tpu.pipeline_mode<synchronous>, transform_indices = @transform_1, window_bounds = array<i64: 192, 32>}, {pipeline_mode = #tpu.pipeline_mode<synchronous>, transform_indices = @transform_2, window_bounds = array<i64: 1, 32>}, {pipeline_mode = #tpu.pipeline_mode<synchronous>, transform_indices = @transform_3, window_bounds = array<i64: 32, 128>}, {pipeline_mode = #tpu.pipeline_mode<synchronous>, transform_indices = @transform_4, window_bounds = array<i64: 1, 128>}, {transform_indices = @transform_5, window_bounds = array<i64: 32, 128>}]} {
    %c0 = arith.constant 0 : index
    %c0_0 = arith.constant 0 : index
    %0 = vector.load %arg1[%c0, %c0_0] : memref<128x192xbf16, #tpu.memory_space<vmem>>, vector<128x192xbf16>
    %c0_1 = arith.constant 0 : index
    %c0_2 = arith.constant 0 : index
    %1 = vector.load %arg2[%c0_1, %c0_2] : memref<192x32xbf16, #tpu.memory_space<vmem>>, vector<192x32xbf16>
    %cst = arith.constant dense<0.000000e+00> : vector<128x32xf32>
    %2 = tpu.matmul %0, %1, %cst {dimension_numbers = #tpu.dot_dimension_numbers<[1], [0], [0], [1], [0, 0, 1, 1], [], []>} : vector<128x192xbf16>, vector<192x32xbf16>, vector<128x32xf32> -> vector<128x32xf32>
    %c0_3 = arith.constant 0 : index
    %c0_4 = arith.constant 0 : index
    %3 = vector.load %arg3[%c0_3, %c0_4] : memref<1x32xf32, #tpu.memory_space<vmem>>, vector<1x32xf32>
    %4 = vector.broadcast %3 : vector<1x32xf32> to vector<128x32xf32>
    %5 = arith.addf %2, %4 : vector<128x32xf32>
    %cst_5 = arith.constant 0.000000e+00 : f32
    %6 = vector.broadcast %cst_5 : f32 to vector<128x32xf32>
    %7 = arith.maximumf %5, %6 : vector<128x32xf32>
    %8 = tpu.iota {dimensions = array<i32: 0>} : vector<32x128xi32>
    %9 = tpu.iota {dimensions = array<i32: 1>} : vector<32x128xi32>
    %c4_i32 = arith.constant 4 : i32
    %10 = vector.broadcast %c4_i32 : i32 to vector<32x128xi32>
    %11 = arith.muli %8, %10 : vector<32x128xi32>
    %12 = arith.subi %9, %11 : vector<32x128xi32>
    %c0_i32 = arith.constant 0 : i32
    %13 = vector.broadcast %c0_i32 : i32 to vector<32x128xi32>
    %14 = arith.cmpi sge, %12, %13 : vector<32x128xi32>
    %c4_i32_6 = arith.constant 4 : i32
    %15 = vector.broadcast %c4_i32_6 : i32 to vector<32x128xi32>
    %16 = arith.cmpi slt, %12, %15 : vector<32x128xi32>
    %17 = arith.andi %14, %16 : vector<32x128xi1>
    %cst_7 = arith.constant 2.500000e-01 : f32
    %cst_8 = arith.constant 0.000000e+00 : f32
    %18 = vector.broadcast %cst_7 : f32 to vector<32x128xf32>
    %19 = vector.broadcast %cst_8 : f32 to vector<32x128xf32>
    %20 = arith.select %17, %18, %19 : vector<32x128xi1>, vector<32x128xf32>
    %cst_9 = arith.constant dense<0.000000e+00> : vector<32x32xf32>
    %21 = tpu.matmul %20, %7, %cst_9 {dimension_numbers = #tpu.dot_dimension_numbers<[1], [0], [0], [1], [0, 0, 1, 1], [], []>} : vector<32x128xf32>, vector<128x32xf32>, vector<32x32xf32> -> vector<32x32xf32>
    %c0_10 = arith.constant 0 : index
    %c0_11 = arith.constant 0 : index
    %22 = vector.load %arg4[%c0_10, %c0_11] : memref<32x128xf32, #tpu.memory_space<vmem>>, vector<32x128xf32>
    %cst_12 = arith.constant dense<0.000000e+00> : vector<32x128xf32>
    %23 = tpu.matmul %21, %22, %cst_12 {dimension_numbers = #tpu.dot_dimension_numbers<[1], [0], [0], [1], [0, 0, 1, 1], [], []>} : vector<32x32xf32>, vector<32x128xf32>, vector<32x128xf32> -> vector<32x128xf32>
    %c0_13 = arith.constant 0 : index
    %c0_14 = arith.constant 0 : index
    %24 = vector.load %arg5[%c0_13, %c0_14] : memref<1x128xf32, #tpu.memory_space<vmem>>, vector<1x128xf32>
    %25 = vector.broadcast %24 : vector<1x128xf32> to vector<32x128xf32>
    %26 = arith.addf %23, %25 : vector<32x128xf32>
    %27 = arith.mulf %26, %26 : vector<32x128xf32>
    %cst_15 = arith.constant dense<0.000000e+00> : vector<32xf32>
    %28 = vector.multi_reduction <add>, %27, %cst_15 [1] : vector<32x128xf32> to vector<32xf32>
    %29 = vector.shape_cast %28 : vector<32xf32> to vector<32x1xf32>
    %cst_16 = arith.constant 1.000000e-24 : f32
    %30 = vector.broadcast %cst_16 : f32 to vector<32x1xf32>
    %31 = arith.maximumf %29, %30 : vector<32x1xf32>
    %32 = math.rsqrt %31 : vector<32x1xf32>
    %33 = vector.broadcast %32 : vector<32x1xf32> to vector<32x128xf32>
    %34 = arith.mulf %26, %33 : vector<32x128xf32>
    %c0_17 = arith.constant 0 : index
    %c0_18 = arith.constant 0 : index
    %35 = vector.load %arg6[%c0_17, %c0_18] : memref<32x128xf32, #tpu.memory_space<vmem>>, vector<32x128xf32>
    tpu.vector_store %arg6[%c0_17, %c0_18], %34 {strides = array<i32>} : memref<32x128xf32, #tpu.memory_space<vmem>>, vector<32x128xf32>,
    return
  }
  func.func @transform_0(%arg0: i32) -> (i32, i32) {
    %c0_i32 = arith.constant 0 : i32
    %c0_i32_0 = arith.constant 0 : i32
    return %arg0, %c0_i32 : i32, i32
  }
  func.func @transform_1(%arg0: i32) -> (i32, i32) {
    %c0_i32 = arith.constant 0 : i32
    %c0_i32_0 = arith.constant 0 : i32
    %c0_i32_1 = arith.constant 0 : i32
    return %c0_i32, %c0_i32_0 : i32, i32
  }
  func.func @transform_2(%arg0: i32) -> (i32, i32) {
    %c0_i32 = arith.constant 0 : i32
    %c0_i32_0 = arith.constant 0 : i32
    %c0_i32_1 = arith.constant 0 : i32
    return %c0_i32, %c0_i32_0 : i32, i32
  }
  func.func @transform_3(%arg0: i32) -> (i32, i32) {
    %c0_i32 = arith.constant 0 : i32
    %c0_i32_0 = arith.constant 0 : i32
    %c0_i32_1 = arith.constant 0 : i32
    return %c0_i32, %c0_i32_0 : i32, i32
  }
  func.func @transform_4(%arg0: i32) -> (i32, i32) {
    %c0_i32 = arith.constant 0 : i32
    %c0_i32_0 = arith.constant 0 : i32
    %c0_i32_1 = arith.constant 0 : i32
    return %c0_i32, %c0_i32_0 : i32, i32
  }
  func.func @transform_5(%arg0: i32) -> (i32, i32) {
    %c0_i32 = arith.constant 0 : i32
    %c0_i32_0 = arith.constant 0 : i32
    return %arg0, %c0_i32 : i32, i32
  }
}

module attributes {stable_mosaic.version = 11 : i64} {
  func.func @walk_xent_kernel(%arg0: i32, %arg1: memref<1x4x8x128xf32, #tpu.memory_space<vmem>>, %arg2: memref<1x1x2xf32, #tpu.memory_space<vmem>>, %arg3: memref<1x1x2xf32, #tpu.memory_space<vmem>>) attributes {dimension_semantics = [#tpu.dimension_semantics<parallel>], iteration_bounds = array<i64: 2>, scalar_prefetch = 0 : i64, scratch_operands = 0 : i64, tpu.core_type = #tpu.core_type<tc>, window_params = [{transform_indices = @transform_0, window_bounds = array<i64: 1, 4, 8, 128>}, {transform_indices = @transform_1, window_bounds = array<i64: 1, 1, 2>}, {transform_indices = @transform_2, window_bounds = array<i64: 1, 1, 2>}]} {
    %0 = tpu.iota {dimensions = array<i32: 0>} : vector<8x8xi32>
    %1 = tpu.iota {dimensions = array<i32: 1>} : vector<8x8xi32>
    %2 = arith.cmpi eq, %0, %1 : vector<8x8xi32>
    %3 = arith.extui %2 : vector<8x8xi1> to vector<8x8xi32>
    %4 = arith.sitofp %3 : vector<8x8xi32> to vector<8x8xf32>
    %5 = tpu.iota {dimensions = array<i32: 0>} : vector<8x1xi32>
    %cst = arith.constant 0.000000e+00 : f32
    %6 = vector.broadcast %cst : f32 to vector<1x1xf32>
    %cst_0 = arith.constant 0.000000e+00 : f32
    %7 = vector.broadcast %cst_0 : f32 to vector<1x1xf32>
    %cst_1 = arith.constant 0.000000e+00 : f32
    %8 = vector.broadcast %cst_1 : f32 to vector<1x1xf32>
    %cst_2 = arith.constant 0.000000e+00 : f32
    %9 = vector.broadcast %cst_2 : f32 to vector<1x1xf32>
    %c0 = arith.constant 0 : index
    %c0_3 = arith.constant 0 : index
    %c0_4 = arith.constant 0 : index
    %c0_5 = arith.constant 0 : index
    %10 = vector.load %arg1[%c0, %c0_3, %c0_4, %c0_5] : memref<1x4x8x128xf32, #tpu.memory_space<vmem>>, vector<1x1x8x128xf32>
    %11 = vector.shape_cast %10 : vector<1x1x8x128xf32> to vector<8x128xf32>
    %c0_6 = arith.constant 0 : index
    %c1 = arith.constant 1 : index
    %c0_7 = arith.constant 0 : index
    %c0_8 = arith.constant 0 : index
    %12 = vector.load %arg1[%c0_6, %c1, %c0_7, %c0_8] : memref<1x4x8x128xf32, #tpu.memory_space<vmem>>, vector<1x1x8x128xf32>
    %13 = vector.shape_cast %12 : vector<1x1x8x128xf32> to vector<8x128xf32>
    %c0_9 = arith.constant 0 : index
    %c2 = arith.constant 2 : index
    %c0_10 = arith.constant 0 : index
    %c0_11 = arith.constant 0 : index
    %14 = vector.load %arg1[%c0_9, %c2, %c0_10, %c0_11] : memref<1x4x8x128xf32, #tpu.memory_space<vmem>>, vector<1x1x8x128xf32>
    %15 = vector.shape_cast %14 : vector<1x1x8x128xf32> to vector<8x128xf32>
    %c0_12 = arith.constant 0 : index
    %c3 = arith.constant 3 : index
    %c0_13 = arith.constant 0 : index
    %c0_14 = arith.constant 0 : index
    %16 = vector.load %arg1[%c0_12, %c3, %c0_13, %c0_14] : memref<1x4x8x128xf32, #tpu.memory_space<vmem>>, vector<1x1x8x128xf32>
    %17 = vector.shape_cast %16 : vector<1x1x8x128xf32> to vector<8x128xf32>
    %cst_15 = arith.constant dense<0.000000e+00> : vector<8x8xf32>
    %18 = tpu.matmul %11, %13, %cst_15 {dimension_numbers = #tpu.dot_dimension_numbers<[1], [1], [0], [0], [0, 0, 1, 0], [], []>} : vector<8x128xf32>, vector<8x128xf32>, vector<8x8xf32> -> vector<8x8xf32>
    %cst_16 = arith.constant 14.2857141 : f32
    %19 = vector.broadcast %cst_16 : f32 to vector<8x8xf32>
    %20 = arith.mulf %18, %19 : vector<8x8xf32>
    %cst_17 = arith.constant dense<0xFF800000> : vector<8xf32>
    %21 = vector.multi_reduction <maximumf>, %20, %cst_17 [1] : vector<8x8xf32> to vector<8xf32>
    %22 = vector.shape_cast %21 : vector<8xf32> to vector<8x1xf32>
    %23 = vector.broadcast %22 : vector<8x1xf32> to vector<8x8xf32>
    %24 = arith.subf %20, %23 : vector<8x8xf32>
    %25 = math.exp %24 : vector<8x8xf32>
    %cst_18 = arith.constant dense<0.000000e+00> : vector<8xf32>
    %26 = vector.multi_reduction <add>, %25, %cst_18 [1] : vector<8x8xf32> to vector<8xf32>
    %27 = vector.shape_cast %26 : vector<8xf32> to vector<8x1xf32>
    %28 = tpu.reciprocal %27 {approx = true} : vector<8x1xf32> -> vector<8x1xf32>
    %29 = vector.broadcast %28 : vector<8x1xf32> to vector<8x8xf32>
    %30 = arith.mulf %25, %29 : vector<8x8xf32>
    %31 = tpu.transpose %18, [1, 0] : vector<8x8xf32> -> vector<8x8xf32>
    %cst_19 = arith.constant 14.2857141 : f32
    %32 = vector.broadcast %cst_19 : f32 to vector<8x8xf32>
    %33 = arith.mulf %31, %32 : vector<8x8xf32>
    %cst_20 = arith.constant dense<0xFF800000> : vector<8xf32>
    %34 = vector.multi_reduction <maximumf>, %33, %cst_20 [1] : vector<8x8xf32> to vector<8xf32>
    %35 = vector.shape_cast %34 : vector<8xf32> to vector<8x1xf32>
    %36 = vector.broadcast %35 : vector<8x1xf32> to vector<8x8xf32>
    %37 = arith.subf %33, %36 : vector<8x8xf32>
    %38 = math.exp %37 : vector<8x8xf32>
    %cst_21 = arith.constant dense<0.000000e+00> : vector<8xf32>
    %39 = vector.multi_reduction <add>, %38, %cst_21 [1] : vector<8x8xf32> to vector<8xf32>
    %40 = vector.shape_cast %39 : vector<8xf32> to vector<8x1xf32>
    %41 = tpu.reciprocal %40 {approx = true} : vector<8x1xf32> -> vector<8x1xf32>
    %42 = vector.broadcast %41 : vector<8x1xf32> to vector<8x8xf32>
    %43 = arith.mulf %38, %42 : vector<8x8xf32>
    %cst_22 = arith.constant dense<0.000000e+00> : vector<8x8xf32>
    %44 = tpu.matmul %13, %15, %cst_22 {dimension_numbers = #tpu.dot_dimension_numbers<[1], [1], [0], [0], [0, 0, 1, 0], [], []>} : vector<8x128xf32>, vector<8x128xf32>, vector<8x8xf32> -> vector<8x8xf32>
    %cst_23 = arith.constant 14.2857141 : f32
    %45 = vector.broadcast %cst_23 : f32 to vector<8x8xf32>
    %46 = arith.mulf %44, %45 : vector<8x8xf32>
    %cst_24 = arith.constant dense<0xFF800000> : vector<8xf32>
    %47 = vector.multi_reduction <maximumf>, %46, %cst_24 [1] : vector<8x8xf32> to vector<8xf32>
    %48 = vector.shape_cast %47 : vector<8xf32> to vector<8x1xf32>
    %49 = vector.broadcast %48 : vector<8x1xf32> to vector<8x8xf32>
    %50 = arith.subf %46, %49 : vector<8x8xf32>
    %51 = math.exp %50 : vector<8x8xf32>
    %cst_25 = arith.constant dense<0.000000e+00> : vector<8xf32>
    %52 = vector.multi_reduction <add>, %51, %cst_25 [1] : vector<8x8xf32> to vector<8xf32>
    %53 = vector.shape_cast %52 : vector<8xf32> to vector<8x1xf32>
    %54 = tpu.reciprocal %53 {approx = true} : vector<8x1xf32> -> vector<8x1xf32>
    %55 = vector.broadcast %54 : vector<8x1xf32> to vector<8x8xf32>
    %56 = arith.mulf %51, %55 : vector<8x8xf32>
    %57 = tpu.transpose %44, [1, 0] : vector<8x8xf32> -> vector<8x8xf32>
    %cst_26 = arith.constant 14.2857141 : f32
    %58 = vector.broadcast %cst_26 : f32 to vector<8x8xf32>
    %59 = arith.mulf %57, %58 : vector<8x8xf32>
    %cst_27 = arith.constant dense<0xFF800000> : vector<8xf32>
    %60 = vector.multi_reduction <maximumf>, %59, %cst_27 [1] : vector<8x8xf32> to vector<8xf32>
    %61 = vector.shape_cast %60 : vector<8xf32> to vector<8x1xf32>
    %62 = vector.broadcast %61 : vector<8x1xf32> to vector<8x8xf32>
    %63 = arith.subf %59, %62 : vector<8x8xf32>
    %64 = math.exp %63 : vector<8x8xf32>
    %cst_28 = arith.constant dense<0.000000e+00> : vector<8xf32>
    %65 = vector.multi_reduction <add>, %64, %cst_28 [1] : vector<8x8xf32> to vector<8xf32>
    %66 = vector.shape_cast %65 : vector<8xf32> to vector<8x1xf32>
    %67 = tpu.reciprocal %66 {approx = true} : vector<8x1xf32> -> vector<8x1xf32>
    %68 = vector.broadcast %67 : vector<8x1xf32> to vector<8x8xf32>
    %69 = arith.mulf %64, %68 : vector<8x8xf32>
    %cst_29 = arith.constant dense<0.000000e+00> : vector<8x8xf32>
    %70 = tpu.matmul %15, %17, %cst_29 {dimension_numbers = #tpu.dot_dimension_numbers<[1], [1], [0], [0], [0, 0, 1, 0], [], []>} : vector<8x128xf32>, vector<8x128xf32>, vector<8x8xf32> -> vector<8x8xf32>
    %cst_30 = arith.constant 14.2857141 : f32
    %71 = vector.broadcast %cst_30 : f32 to vector<8x8xf32>
    %72 = arith.mulf %70, %71 : vector<8x8xf32>
    %cst_31 = arith.constant dense<0xFF800000> : vector<8xf32>
    %73 = vector.multi_reduction <maximumf>, %72, %cst_31 [1] : vector<8x8xf32> to vector<8xf32>
    %74 = vector.shape_cast %73 : vector<8xf32> to vector<8x1xf32>
    %75 = vector.broadcast %74 : vector<8x1xf32> to vector<8x8xf32>
    %76 = arith.subf %72, %75 : vector<8x8xf32>
    %77 = math.exp %76 : vector<8x8xf32>
    %cst_32 = arith.constant dense<0.000000e+00> : vector<8xf32>
    %78 = vector.multi_reduction <add>, %77, %cst_32 [1] : vector<8x8xf32> to vector<8xf32>
    %79 = vector.shape_cast %78 : vector<8xf32> to vector<8x1xf32>
    %80 = tpu.reciprocal %79 {approx = true} : vector<8x1xf32> -> vector<8x1xf32>
    %81 = vector.broadcast %80 : vector<8x1xf32> to vector<8x8xf32>
    %82 = arith.mulf %77, %81 : vector<8x8xf32>
    %83 = tpu.transpose %70, [1, 0] : vector<8x8xf32> -> vector<8x8xf32>
    %cst_33 = arith.constant 14.2857141 : f32
    %84 = vector.broadcast %cst_33 : f32 to vector<8x8xf32>
    %85 = arith.mulf %83, %84 : vector<8x8xf32>
    %cst_34 = arith.constant dense<0xFF800000> : vector<8xf32>
    %86 = vector.multi_reduction <maximumf>, %85, %cst_34 [1] : vector<8x8xf32> to vector<8xf32>
    %87 = vector.shape_cast %86 : vector<8xf32> to vector<8x1xf32>
    %88 = vector.broadcast %87 : vector<8x1xf32> to vector<8x8xf32>
    %89 = arith.subf %85, %88 : vector<8x8xf32>
    %90 = math.exp %89 : vector<8x8xf32>
    %cst_35 = arith.constant dense<0.000000e+00> : vector<8xf32>
    %91 = vector.multi_reduction <add>, %90, %cst_35 [1] : vector<8x8xf32> to vector<8xf32>
    %92 = vector.shape_cast %91 : vector<8xf32> to vector<8x1xf32>
    %93 = tpu.reciprocal %92 {approx = true} : vector<8x1xf32> -> vector<8x1xf32>
    %94 = vector.broadcast %93 : vector<8x1xf32> to vector<8x8xf32>
    %95 = arith.mulf %90, %94 : vector<8x8xf32>
    %cst_36 = arith.constant dense<0.000000e+00> : vector<8x8xf32>
    %96 = tpu.matmul %30, %56, %cst_36 {dimension_numbers = #tpu.dot_dimension_numbers<[1], [0], [0], [1], [0, 0, 1, 1], [], []>} : vector<8x8xf32>, vector<8x8xf32>, vector<8x8xf32> -> vector<8x8xf32>
    %cst_37 = arith.constant dense<0.000000e+00> : vector<8x8xf32>
    %97 = tpu.matmul %69, %43, %cst_37 {dimension_numbers = #tpu.dot_dimension_numbers<[1], [0], [0], [1], [0, 0, 1, 1], [], []>} : vector<8x8xf32>, vector<8x8xf32>, vector<8x8xf32> -> vector<8x8xf32>
    %cst_38 = arith.constant dense<0.000000e+00> : vector<8x8xf32>
    %98 = tpu.matmul %96, %97, %cst_38 {dimension_numbers = #tpu.dot_dimension_numbers<[1], [0], [0], [1], [0, 0, 1, 1], [], []>} : vector<8x8xf32>, vector<8x8xf32>, vector<8x8xf32> -> vector<8x8xf32>
    %cst_39 = arith.constant 9.99999968E-21 : f32
    %99 = vector.broadcast %cst_39 : f32 to vector<8x8xf32>
    %100 = arith.addf %98, %99 : vector<8x8xf32>
    %101 = math.log %100 : vector<8x8xf32>
    %cst_40 = arith.constant dense<0xFF800000> : vector<8xf32>
    %102 = vector.multi_reduction <maximumf>, %101, %cst_40 [1] : vector<8x8xf32> to vector<8xf32>
    %103 = vector.shape_cast %102 : vector<8xf32> to vector<8x1xf32>
    %104 = vector.broadcast %103 : vector<8x1xf32> to vector<8x8xf32>
    %105 = arith.subf %101, %104 : vector<8x8xf32>
    %106 = math.exp %105 : vector<8x8xf32>
    %cst_41 = arith.constant dense<0.000000e+00> : vector<8xf32>
    %107 = vector.multi_reduction <add>, %106, %cst_41 [1] : vector<8x8xf32> to vector<8xf32>
    %108 = vector.shape_cast %107 : vector<8xf32> to vector<8x1xf32>
    %109 = math.log %108 : vector<8x1xf32>
    %110 = arith.addf %103, %109 : vector<8x1xf32>
    %111 = arith.mulf %101, %4 : vector<8x8xf32>
    %cst_42 = arith.constant dense<0.000000e+00> : vector<8xf32>
    %112 = vector.multi_reduction <add>, %111, %cst_42 [1] : vector<8x8xf32> to vector<8xf32>
    %113 = vector.shape_cast %112 : vector<8xf32> to vector<8x1xf32>
    %114 = arith.subf %110, %113 : vector<8x1xf32>
    %115 = vector.broadcast %103 : vector<8x1xf32> to vector<8x8xf32>
    %116 = arith.cmpf oge, %101, %115 : vector<8x8xf32>
    %c8_i32 = arith.constant 8 : i32
    %117 = vector.broadcast %c8_i32 : i32 to vector<8x8xi32>
    %118 = arith.select %116, %1, %117 : vector<8x8xi1>, vector<8x8xi32>
    %cst_43 = arith.constant dense<2147483647> : vector<8xi32>
    %119 = vector.multi_reduction <minsi>, %118, %cst_43 [1] : vector<8x8xi32> to vector<8xi32>
    %120 = vector.shape_cast %119 : vector<8xi32> to vector<8x1xi32>
    %121 = arith.cmpi eq, %120, %5 : vector<8x1xi32>
    %122 = arith.extui %121 : vector<8x1xi1> to vector<8x1xi32>
    %123 = arith.sitofp %122 : vector<8x1xi32> to vector<8x1xf32>
    %cst_44 = arith.constant dense<0.000000e+00> : vector<1xf32>
    %124 = vector.multi_reduction <add>, %114, %cst_44 [0] : vector<8x1xf32> to vector<1xf32>
    %125 = vector.shape_cast %124 : vector<1xf32> to vector<1x1xf32>
    %cst_45 = arith.constant 1.000000e+00 : f32
    %126 = vector.broadcast %cst_45 : f32 to vector<1x1xf32>
    %127 = arith.mulf %126, %125 : vector<1x1xf32>
    %128 = arith.addf %6, %127 : vector<1x1xf32>
    %cst_46 = arith.constant dense<0.000000e+00> : vector<1xf32>
    %129 = vector.multi_reduction <add>, %123, %cst_46 [0] : vector<8x1xf32> to vector<1xf32>
    %130 = vector.shape_cast %129 : vector<1xf32> to vector<1x1xf32>
    %cst_47 = arith.constant 1.000000e+00 : f32
    %131 = vector.broadcast %cst_47 : f32 to vector<1x1xf32>
    %132 = arith.mulf %131, %130 : vector<1x1xf32>
    %133 = arith.addf %8, %132 : vector<1x1xf32>
    %cst_48 = arith.constant dense<0.000000e+00> : vector<8x8xf32>
    %134 = tpu.matmul %96, %82, %cst_48 {dimension_numbers = #tpu.dot_dimension_numbers<[1], [0], [0], [1], [0, 0, 1, 1], [], []>} : vector<8x8xf32>, vector<8x8xf32>, vector<8x8xf32> -> vector<8x8xf32>
    %cst_49 = arith.constant dense<0.000000e+00> : vector<8x8xf32>
    %135 = tpu.matmul %95, %97, %cst_49 {dimension_numbers = #tpu.dot_dimension_numbers<[1], [0], [0], [1], [0, 0, 1, 1], [], []>} : vector<8x8xf32>, vector<8x8xf32>, vector<8x8xf32> -> vector<8x8xf32>
    %cst_50 = arith.constant dense<0.000000e+00> : vector<8x8xf32>
    %136 = tpu.matmul %134, %135, %cst_50 {dimension_numbers = #tpu.dot_dimension_numbers<[1], [0], [0], [1], [0, 0, 1, 1], [], []>} : vector<8x8xf32>, vector<8x8xf32>, vector<8x8xf32> -> vector<8x8xf32>
    %cst_51 = arith.constant 9.99999968E-21 : f32
    %137 = vector.broadcast %cst_51 : f32 to vector<8x8xf32>
    %138 = arith.addf %136, %137 : vector<8x8xf32>
    %139 = math.log %138 : vector<8x8xf32>
    %cst_52 = arith.constant dense<0xFF800000> : vector<8xf32>
    %140 = vector.multi_reduction <maximumf>, %139, %cst_52 [1] : vector<8x8xf32> to vector<8xf32>
    %141 = vector.shape_cast %140 : vector<8xf32> to vector<8x1xf32>
    %142 = vector.broadcast %141 : vector<8x1xf32> to vector<8x8xf32>
    %143 = arith.subf %139, %142 : vector<8x8xf32>
    %144 = math.exp %143 : vector<8x8xf32>
    %cst_53 = arith.constant dense<0.000000e+00> : vector<8xf32>
    %145 = vector.multi_reduction <add>, %144, %cst_53 [1] : vector<8x8xf32> to vector<8xf32>
    %146 = vector.shape_cast %145 : vector<8xf32> to vector<8x1xf32>
    %147 = math.log %146 : vector<8x1xf32>
    %148 = arith.addf %141, %147 : vector<8x1xf32>
    %149 = arith.mulf %139, %4 : vector<8x8xf32>
    %cst_54 = arith.constant dense<0.000000e+00> : vector<8xf32>
    %150 = vector.multi_reduction <add>, %149, %cst_54 [1] : vector<8x8xf32> to vector<8xf32>
    %151 = vector.shape_cast %150 : vector<8xf32> to vector<8x1xf32>
    %152 = arith.subf %148, %151 : vector<8x1xf32>
    %153 = vector.broadcast %141 : vector<8x1xf32> to vector<8x8xf32>
    %154 = arith.cmpf oge, %139, %153 : vector<8x8xf32>
    %c8_i32_55 = arith.constant 8 : i32
    %155 = vector.broadcast %c8_i32_55 : i32 to vector<8x8xi32>
    %156 = arith.select %154, %1, %155 : vector<8x8xi1>, vector<8x8xi32>
    %cst_56 = arith.constant dense<2147483647> : vector<8xi32>
    %157 = vector.multi_reduction <minsi>, %156, %cst_56 [1] : vector<8x8xi32> to vector<8xi32>
    %158 = vector.shape_cast %157 : vector<8xi32> to vector<8x1xi32>
    %159 = arith.cmpi eq, %158, %5 : vector<8x1xi32>
    %160 = arith.extui %159 : vector<8x1xi1> to vector<8x1xi32>
    %161 = arith.sitofp %160 : vector<8x1xi32> to vector<8x1xf32>
    %cst_57 = arith.constant dense<0.000000e+00> : vector<1xf32>
    %162 = vector.multi_reduction <add>, %152, %cst_57 [0] : vector<8x1xf32> to vector<1xf32>
    %163 = vector.shape_cast %162 : vector<1xf32> to vector<1x1xf32>
    %cst_58 = arith.constant 1.000000e+00 : f32
    %164 = vector.broadcast %cst_58 : f32 to vector<1x1xf32>
    %165 = arith.mulf %164, %163 : vector<1x1xf32>
    %166 = arith.addf %7, %165 : vector<1x1xf32>
    %cst_59 = arith.constant dense<0.000000e+00> : vector<1xf32>
    %167 = vector.multi_reduction <add>, %161, %cst_59 [0] : vector<8x1xf32> to vector<1xf32>
    %168 = vector.shape_cast %167 : vector<1xf32> to vector<1x1xf32>
    %cst_60 = arith.constant 1.000000e+00 : f32
    %169 = vector.broadcast %cst_60 : f32 to vector<1x1xf32>
    %170 = arith.mulf %169, %168 : vector<1x1xf32>
    %171 = arith.addf %9, %170 : vector<1x1xf32>
    %172 = tpu.concatenate %128, %166 in 1 : vector<1x1xf32>, vector<1x1xf32> -> vector<1x2xf32>
    %c0_61 = arith.constant 0 : index
    %c0_62 = arith.constant 0 : index
    %c0_63 = arith.constant 0 : index
    %173 = vector.load %arg2[%c0_61, %c0_62, %c0_63] : memref<1x1x2xf32, #tpu.memory_space<vmem>>, vector<1x1x2xf32>
    %174 = vector.shape_cast %173 : vector<1x1x2xf32> to vector<1x2xf32>
    %175 = vector.shape_cast %172 : vector<1x2xf32> to vector<1x1x2xf32>
    tpu.vector_store %arg2[%c0_61, %c0_62, %c0_63], %175 {strides = array<i32>} : memref<1x1x2xf32, #tpu.memory_space<vmem>>, vector<1x1x2xf32>,
    %176 = tpu.concatenate %133, %171 in 1 : vector<1x1xf32>, vector<1x1xf32> -> vector<1x2xf32>
    %c0_64 = arith.constant 0 : index
    %c0_65 = arith.constant 0 : index
    %c0_66 = arith.constant 0 : index
    %177 = vector.load %arg3[%c0_64, %c0_65, %c0_66] : memref<1x1x2xf32, #tpu.memory_space<vmem>>, vector<1x1x2xf32>
    %178 = vector.shape_cast %177 : vector<1x1x2xf32> to vector<1x2xf32>
    %179 = vector.shape_cast %176 : vector<1x2xf32> to vector<1x1x2xf32>
    tpu.vector_store %arg3[%c0_64, %c0_65, %c0_66], %179 {strides = array<i32>} : memref<1x1x2xf32, #tpu.memory_space<vmem>>, vector<1x1x2xf32>,
    return
  }
  func.func @transform_0(%arg0: i32) -> (i32, i32, i32, i32) {
    %c0_i32 = arith.constant 0 : i32
    %c0_i32_0 = arith.constant 0 : i32
    %c0_i32_1 = arith.constant 0 : i32
    %c0_i32_2 = arith.constant 0 : i32
    return %arg0, %c0_i32, %c0_i32_0, %c0_i32_1 : i32, i32, i32, i32
  }
  func.func @transform_1(%arg0: i32) -> (i32, i32, i32) {
    %c0_i32 = arith.constant 0 : i32
    %c0_i32_0 = arith.constant 0 : i32
    %c0_i32_1 = arith.constant 0 : i32
    return %arg0, %c0_i32, %c0_i32_0 : i32, i32, i32
  }
  func.func @transform_2(%arg0: i32) -> (i32, i32, i32) {
    %c0_i32 = arith.constant 0 : i32
    %c0_i32_0 = arith.constant 0 : i32
    %c0_i32_1 = arith.constant 0 : i32
    return %arg0, %c0_i32, %c0_i32_0 : i32, i32, i32
  }
}

</mosaic_0001>

<bundles_post_ra>
// kernel: crw_forward.2
= control target key start
LH: loop header
LB: loop body
LE: loop exit
PB: predicated region body
PF: predicated region fallthrough
CT: control target
= control target key end

     0   :  { %s1143_s18 = smov 0   ;;  %s1278_s0 = inlined_call_operand.vmem [shape: bf16[256,192], index: 0, kind: input, shape index: {}]   ;;  %s1279_s1 = inlined_call_operand.vmem [shape: bf16[192,32], index: 1, kind: input, shape index: {}]   ;;  %s1280_s2 = inlined_call_operand.vmem [shape: f32[1,32], index: 2, kind: input, shape index: {}]   ;;  %s1281_s3 = inlined_call_operand.vmem [shape: f32[32,128], index: 3, kind: input, shape index: {}]   ;;  %s1282_s4 = inlined_call_operand.vmem [shape: f32[1,128], index: 4, kind: input, shape index: {}]   ;;  %s1283_s5 = inlined_call_operand.vmem [shape: f32[64,128], index: 5, kind: output, shape index: {}]  }
   0x1 LB: > { %s870_s19 = sadd.s32 4294967295, %s1109_s18   ;;  %p874_p0 = scmp.ge.s32.totalorder %s1109_s18, 1  ;;  %s1109_s18 = sphi %s1143_s18, %s15_s18  }
   0x2   : > { %p189_p1 = scmp.lt.s32.totalorder %s1109_s18, 3 }
   0x4   : > { %p190_p2 = pnand %p874_p0, %p189_p1 }
   0x5   : > { %v1059_v0 = vld [vmem:[%s1279_s1] sm:$0xff] (!%p190_p2)   ;;  %v1111_v1 = vmov (!%p190_p2), 0   ;;  %s875_s22 = sshll.u32 (!%p190_p2), %s870_s19, 4  ;;  %v1060_v2 = vld [vmem:[%s1279_s1 + $0x8] sm:$0xff] (!%p190_p2)   ;;  %v1061_v3 = vld [vmem:[%s1279_s1 + $0x10] sm:$0xff] (!%p190_p2)   ;;  %vm423_vm0 = vcmask (!%p190_p2), 523264   ;;  %v561_v29 = vlaneseq (!%p190_p2) }
   0x6   : > { %193 = sbr.rel (%p190_p2) target bundleno = 931 (0x3a3), region = 40  ;;  %448 = vmatprep.subr.bf16.mxu0 (!%p190_p2), %v1111_v1  ;;  %p219_p3 = scmp.lt.s32.totalorder (!%p190_p2), %s875_s22, 31  ;;  %v1062_v4 = vld [vmem:[%s1279_s1 + $0x18] sm:$0xff] (!%p190_p2)   ;;  %v1063_v6 = vld [vmem:[%s1279_s1 + $0x20] sm:$0xff] (!%p190_p2)   ;;  %v1064_v7 = vld [vmem:[%s1279_s1 + $0x28] sm:$0xff] (!%p190_p2)   ;;  %v1112_v41 = vmov (!%p190_p2), 0.25  }
   0x7   : > { %449 = vmatpush1.bf16.msra.mxu0 (!%p190_p2), %v1059_v0  ;;  %v1065_v8 = vld [vmem:[%s1279_s1 + $0x30] sm:$0xff] (!%p190_p2)   ;;  %v1066_v9 = vld [vmem:[%s1279_s1 + $0x38] sm:$0xff] (!%p190_p2)   ;;  %v1067_v10 = vld [vmem:[%s1279_s1 + $0x40] sm:$0xff] (!%p190_p2)   ;;  %v562_v30 = vshrl.u32 (!%p190_p2), %v561_v29, 7  ;;  %v567_v32 = vand.u32 (!%p190_p2), 127, %v561_v29  ;;  %vm688_vm13 = vcmask (!%p190_p2), 261120  }
   0x8   : > { %450 = vmatprep.subr.bf16.mxu0 (!%p190_p2), %v1111_v1  ;;  %v1068_v11 = vld [vmem:[%s1279_s1 + $0x48] sm:$0xff] (!%p190_p2)   ;;  %v1069_v12 = vld [vmem:[%s1279_s1 + $0x50] sm:$0xff] (!%p190_p2)   ;;  %v1070_v13 = vld [vmem:[%s1279_s1 + $0x58] sm:$0xff] (!%p190_p2)   ;;  %s878_s13 = sshll.u32 (!%p190_p2), %s870_s19, 2 }
   0x9   : > { %v563_v31 = vadd.s32 (!%p190_p2), 8, %v562_v30  ;;  %v568_v33 = vmul.u32 (!%p190_p2), 4, %v562_v30  ;;  %v564_v36 = vadd.s32 (!%p190_p2), 16, %v562_v30  ;;  %v565_v38 = vadd.s32 (!%p190_p2), 24, %v562_v30  ;;  %v1228_v44 = vld [vmem:[%s1280_s2] ss:$0 sm:$0xff] (!%p190_p2) }
   0xa   : > { %p226_p4 = scmp.lt.s32.totalorder (!%p190_p2), %s878_s13, 7 }
   0xb   : > { %451 = vmatpush1.bf16.msra.mxu0 (!%p190_p2), %v1060_v2  ;;  %v569_v34 = vmul.u32 (!%p190_p2), 4, %v563_v31  ;;  %v572_v35 = vsub.s32 (!%p190_p2), %v567_v32, %v568_v33  ;;  %v570_v39 = vmul.u32 (!%p190_p2), 4, %v564_v36 }
   0xc   : > { %452 = vmatprep.subr.bf16.mxu0 (!%p190_p2), %v1111_v1  ;;  %v571_v40 = vmul.u32 (!%p190_p2), 4, %v565_v38 }
   0xd   : > { %s1285_s22 = smov (!%p219_p3, %s875_s22), 31  ;;  %v1218_v37 = vsub.s32 %v567_v32, %v569_v34  ;;  %vm576_vm1 = vcmp.ge.s32.totalorder %v572_v35, 0  ;;  %vm580_vm2 = vcmp.lt.s32.totalorder %v572_v35, 4  ;;  %v1221_v42 = vsub.s32 %v567_v32, %v570_v39  ;;  %s1287_s13 = smov (!%p226_p4, %s878_s13), 7 }
   0xe   : > { %s928_s27 = sshll.u32 %s1285_s22, 3  ;;  %vm584_vm3 = vmand %vm576_vm1, %vm580_vm2  ;;  %v1223_v43 = vsub.s32 %v567_v32, %v571_v40  ;;  %s879_s14 = sshll.u32 %s1287_s13, 3 }
   0xf   : > { %453 = vmatpush1.bf16.msra.mxu0 %v1061_v3  ;;  %s1168_s7 = scalar_lea.vmem %s1278_s0, %s928_s27  ;;  %989 = vmatprep.mubr.msk.f32.mxu1 %vm584_vm3, %v1112_v41  ;;  %vm577_vm4 = vcmp.ge.s32.totalorder %v1218_v37, 0  ;;  %vm581_vm5 = vcmp.lt.s32.totalorder %v1218_v37, 4  ;;  %vm578_vm6 = vcmp.ge.s32.totalorder %v1221_v42, 0  ;;  %vm582_vm7 = vcmp.lt.s32.totalorder %v1221_v42, 4  ;;  %s229_s19 = scalar_lea.vmem %s1283_s5, %s879_s14 }
  0x10   : > { %454 = vmatprep.subr.bf16.mxu0 %v1111_v1  ;;  %v1073_v5 = vld [vmem:[%s1168_s7 + $0x4] ss:$8 sps:$4 sm:$0xff]   ;;  %v1071_v14 = vld [vmem:[%s1168_s7] ss:$8 sps:$4 sm:$0xff]   ;;  %v1074_v15 = vld [vmem:[%s1168_s7 + $0x14] ss:$8 sps:$4 sm:$0xff]  }
  0x11   : > { %909 = vmatprep.mubr.msk.bf16.mxu0 %vm423_vm0, %v1073_v5  ;;  %v1076_v16 = vld [vmem:[%s1168_s7 + $0x10] ss:$8 sps:$4 sm:$0xff]   ;;  %v1077_v17 = vld [vmem:[%s1168_s7 + $0x24] ss:$8 sps:$4 sm:$0xff]   ;;  %v1079_v18 = vld [vmem:[%s1168_s7 + $0x20] ss:$8 sps:$4 sm:$0xff]  }
  0x12   : > { %v1080_v19 = vld [vmem:[%s1168_s7 + $0x34] ss:$8 sps:$4 sm:$0xff]   ;;  %v1082_v20 = vld [vmem:[%s1168_s7 + $0x30] ss:$8 sps:$4 sm:$0xff]   ;;  %v1083_v21 = vld [vmem:[%s1168_s7 + $0x44] ss:$8 sps:$4 sm:$0xff]  }
  0x13   : > { %455 = vmatpush1.bf16.msra.mxu0 %v1062_v4  ;;  %v1085_v22 = vld [vmem:[%s1168_s7 + $0x40] ss:$8 sps:$4 sm:$0xff]   ;;  %v1086_v23 = vld [vmem:[%s1168_s7 + $0x54] ss:$8 sps:$4 sm:$0xff]   ;;  %v1088_v24 = vld [vmem:[%s1168_s7 + $0x50] ss:$8 sps:$4 sm:$0xff]  }
  0x14   : > { %456 = vmatprep.subr.bf16.mxu0 %v1111_v1  ;;  %v1089_v25 = vld [vmem:[%s1168_s7 + $0x64] ss:$8 sps:$4 sm:$0xff]   ;;  %v1091_v26 = vld [vmem:[%s1168_s7 + $0x60] ss:$8 sps:$4 sm:$0xff]   ;;  %v1092_v27 = vld [vmem:[%s1168_s7 + $0x74] ss:$8 sps:$4 sm:$0xff]  }
  0x15   : > { %v1094_v28 = vld [vmem:[%s1168_s7 + $0x70] ss:$8 sps:$4 sm:$0xff]   ;;  %vm585_vm8 = vmand %vm577_vm4, %vm581_vm5  ;;  %vm579_vm10 = vcmp.ge.s32.totalorder %v1223_v43, 0  ;;  %vm583_vm11 = vcmp.lt.s32.totalorder %v1223_v43, 4  ;;  %v921_v43 = vld [vmem:[%s1282_s4] ss:$0 sm:$0xff] }
  0x16   : > { %vm586_vm9 = vmand %vm578_vm6, %vm582_vm7 }
  0x17   : > { %457 = vmatpush1.bf16.msra.mxu0 %v1063_v6  ;;  %vm587_vm12 = vmand %vm579_vm10, %vm583_vm11 }
  0x18   : > { %458 = vmatprep.subr.bf16.mxu0 %v1111_v1 }
  0x1b   : > { %459 = vmatpush1.bf16.msra.mxu0 %v1064_v7 }
  0x1c   : > { %460 = vmatprep.subr.bf16.mxu0 %v1111_v1 }
  0x1f   : > { %461 = vmatpush1.bf16.msra.mxu0 %v1065_v8 }
  0x20   : > { %462 = vmatprep.subr.bf16.mxu0 %v1111_v1 }
  0x23   : > { %463 = vmatpush1.bf16.msra.mxu0 %v1066_v9 }
  0x24   : > { %464 = vmatprep.subr.bf16.mxu0 %v1111_v1 }
  0x27   : > { %465 = vmatpush1.bf16.msra.mxu0 %v1067_v10 }
  0x28   : > { %466 = vmatprep.subr.bf16.mxu0 %v1111_v1 }
  0x2b   : > { %467 = vmatpush1.bf16.msra.mxu0 %v1068_v11 }
  0x2c   : > { %468 = vmatprep.subr.bf16.mxu0 %v1111_v1 }
  0x2f   : > { %469 = vmatpush1.bf16.msra.mxu0 %v1069_v12 }
  0x30   : > { %470 = vmatprep.subr.bf16.mxu0 %v1111_v1 }
  0x33   : > { %471 = vmatpush1.bf16.msra.mxu0 %v1070_v13 }
  0x36   : > { %481 = vmatmul.mubr.bf16.vlgmr.msra.gmra.mrb[0].mxu0 %v1071_v14 }
  0x37   : > { %910 = vmatprep.mubr.msk.bf16.mxu0 %vm423_vm0, %v1074_v15 }
  0x3e   : > { %489 = vmatmul.mubr.bf16.gmra.mrb[4].mxu0 %v1076_v16 }
  0x3f   : > { %911 = vmatprep.mubr.msk.bf16.mxu0 %vm423_vm0, %v1077_v17 }
  0x46   : > { %497 = vmatmul.mubr.bf16.gmra.mrb[8].mxu0 %v1079_v18 }
  0x47   : > { %912 = vmatprep.mubr.msk.bf16.mxu0 %vm423_vm0, %v1080_v19 }
  0x4e   : > { %505 = vmatmul.mubr.bf16.gmra.mrb[12].mxu0 %v1082_v20 }
  0x4f   : > { %913 = vmatprep.mubr.msk.bf16.mxu0 %vm423_vm0, %v1083_v21 }
  0x56   : > { %513 = vmatmul.mubr.bf16.gmra.mrb[16].mxu0 %v1085_v22 }
  0x57   : > { %914 = vmatprep.mubr.msk.bf16.mxu0 %vm423_vm0, %v1086_v23 }
  0x5e   : > { %521 = vmatmul.mubr.bf16.gmra.mrb[20].mxu0 %v1088_v24 }
  0x5f   : > { %915 = vmatprep.mubr.msk.bf16.mxu0 %vm423_vm0, %v1089_v25 }
  0x66   : > { %529 = vmatmul.mubr.bf16.gmra.mrb[24].mxu0 %v1091_v26 }
  0x67   : > { %916 = vmatprep.mubr.msk.bf16.mxu0 %vm423_vm0, %v1092_v27 }
  0x6e   : > { %537 = vmatmul.mubr.bf16.gmra.mrb[28].mxu0 %v1094_v28 }
 0x109   : > { %v482_v45 = vpop.f32.mrb[0].mxu0 }
 0x10a   : > { %v483_v46 = vadd.f32 %v1228_v44, %v482_v45  ;;  %v484_v47 = vpop.f32.mrb[1].mxu0 }
 0x10b   : > { %v485_v48 = vpop.f32.mrb[2].mxu0 }
 0x10c   : > { %v486_v49 = vadd.f32 %v1228_v44, %v485_v48  ;;  %v487_v50 = vpop.f32.mrb[3].mxu0  ;;  %v545_v51 = vmax.f32 %v483_v46, 0.0 }
 0x10e   : > { %v546_v52 = vmax.f32 %v486_v49, 0.0 }
 0x110   : > { %v1009_v53 = vpack.c.bf16 %v546_v52, %v545_v51 }
 0x111   : > { %v490_v54 = vpop.f32.mrb[4].mxu0 }
 0x112   : > { %v491_v55 = vadd.f32 %v1228_v44, %v490_v54  ;;  %v492_v56 = vpop.f32.mrb[5].mxu0  ;;  %1010 = vmatprep.subr.bf16.mxu1 %v1009_v53 }
 0x113   : > { %v493_v57 = vpop.f32.mrb[6].mxu0  ;;  %1012 = vmatpush3.bf16.msra.mxu1 %v1009_v53  ;;  %v678_v56 = vld [vmem:[%s1281_s3 + $0x8] sm:$0xff] }
 0x114   : > { %v494_v58 = vadd.f32 %v1228_v44, %v493_v57  ;;  %v495_v59 = vpop.f32.mrb[7].mxu0  ;;  %v547_v60 = vmax.f32 %v491_v55, 0.0  ;;  %v677_v55 = vld [vmem:[%s1281_s3] sm:$0xff] }
 0x116   : > { %v548_v61 = vmax.f32 %v494_v58, 0.0 }
 0x118   : > { %v1013_v62 = vpack.c.bf16 %v548_v61, %v547_v60  ;;  %v1041_v60 = vpack.c.bf16 %v678_v56, %v677_v55  ;;  %v680_v61 = vld [vmem:[%s1281_s3 + $0x18] sm:$0xff] }
 0x119   : > { %v498_v63 = vpop.f32.mrb[8].mxu0 }
 0x11a   : > { %v499_v0 = vadd.f32 %v1228_v44, %v498_v63  ;;  %v500_v1 = vpop.f32.mrb[9].mxu0  ;;  %1014 = vmatprep.subr.bf16.mxu1 %v1013_v62 }
 0x11b   : > { %v501_v2 = vpop.f32.mrb[10].mxu0  ;;  %1016 = vmatpush3.bf16.msra.mxu1 %v1013_v62 }
 0x11c   : > { %v502_v3 = vadd.f32 %v1228_v44, %v501_v2  ;;  %v503_v4 = vpop.f32.mrb[11].mxu0  ;;  %v549_v5 = vmax.f32 %v499_v0, 0.0 }
 0x11e   : > { %v550_v6 = vmax.f32 %v502_v3, 0.0 }
 0x120   : > { %v1017_v7 = vpack.c.bf16 %v550_v6, %v549_v5 }
 0x121   : > { %v506_v8 = vpop.f32.mrb[12].mxu0 }
 0x122   : > { %v507_v9 = vadd.f32 %v1228_v44, %v506_v8  ;;  %v508_v10 = vpop.f32.mrb[13].mxu0  ;;  %1018 = vmatprep.subr.bf16.mxu1 %v1017_v7 }
 0x123   : > { %v509_v11 = vpop.f32.mrb[14].mxu0  ;;  %1020 = vmatpush3.bf16.msra.mxu1 %v1017_v7 }
 0x124   : > { %v510_v12 = vadd.f32 %v1228_v44, %v509_v11  ;;  %v511_v13 = vpop.f32.mrb[15].mxu0  ;;  %v551_v14 = vmax.f32 %v507_v9, 0.0 }
 0x126   : > { %v552_v15 = vmax.f32 %v510_v12, 0.0 }
 0x128   : > { %v1021_v16 = vpack.c.bf16 %v552_v15, %v551_v14 }
 0x129   : > { %v514_v17 = vpop.f32.mrb[16].mxu0 }
 0x12a   : > { %v515_v18 = vadd.f32 %v1228_v44, %v514_v17  ;;  %v516_v19 = vpop.f32.mrb[17].mxu0  ;;  %1022 = vmatprep.subr.bf16.mxu1 %v1021_v16 }
 0x12b   : > { %v517_v20 = vpop.f32.mrb[18].mxu0  ;;  %1024 = vmatpush3.bf16.msra.mxu1 %v1021_v16 }
 0x12c   : > { %v518_v21 = vadd.f32 %v1228_v44, %v517_v20  ;;  %v519_v22 = vpop.f32.mrb[19].mxu0  ;;  %v553_v23 = vmax.f32 %v515_v18, 0.0 }
 0x12e   : > { %v554_v24 = vmax.f32 %v518_v21, 0.0 }
 0x130   : > { %v1025_v25 = vpack.c.bf16 %v554_v24, %v553_v23 }
 0x131   : > { %v522_v26 = vpop.f32.mrb[20].mxu0 }
 0x132   : > { %v523_v27 = vadd.f32 %v1228_v44, %v522_v26  ;;  %v524_v28 = vpop.f32.mrb[21].mxu0  ;;  %1026 = vmatprep.subr.bf16.mxu1 %v1025_v25 }
 0x133   : > { %v525_v29 = vpop.f32.mrb[22].mxu0  ;;  %1028 = vmatpush3.bf16.msra.mxu1 %v1025_v25 }
 0x134   : > { %v526_v30 = vadd.f32 %v1228_v44, %v525_v29  ;;  %v527_v31 = vpop.f32.mrb[23].mxu0  ;;  %v555_v32 = vmax.f32 %v523_v27, 0.0 }
 0x136   : > { %v556_v33 = vmax.f32 %v526_v30, 0.0 }
 0x138   : > { %v1029_v34 = vpack.c.bf16 %v556_v33, %v555_v32 }
 0x139   : > { %v530_v35 = vpop.f32.mrb[24].mxu0 }
 0x13a   : > { %v531_v36 = vadd.f32 %v1228_v44, %v530_v35  ;;  %v532_v38 = vpop.f32.mrb[25].mxu0  ;;  %1030 = vmatprep.subr.bf16.mxu1 %v1029_v34 }
 0x13b   : > { %v533_v39 = vpop.f32.mrb[26].mxu0  ;;  %1032 = vmatpush3.bf16.msra.mxu1 %v1029_v34 }
 0x13c   : > { %v534_v40 = vadd.f32 %v1228_v44, %v533_v39  ;;  %v535_v45 = vpop.f32.mrb[27].mxu0  ;;  %v557_v46 = vmax.f32 %v531_v36, 0.0 }
 0x13e   : > { %v558_v47 = vmax.f32 %v534_v40, 0.0 }
 0x140   : > { %v1033_v48 = vpack.c.bf16 %v558_v47, %v557_v46 }
 0x141   : > { %v538_v49 = vpop.f32.mrb[28].mxu0 }
 0x142   : > { %v539_v50 = vadd.f32 %v1228_v44, %v538_v49  ;;  %v540_v51 = vpop.f32.mrb[29].mxu0  ;;  %1034 = vmatprep.subr.bf16.mxu1 %v1033_v48 }
 0x143   : > { %v541_v52 = vpop.f32.mrb[30].mxu0  ;;  %1036 = vmatpush3.bf16.msra.mxu1 %v1033_v48 }
 0x144   : > { %v542_v53 = vadd.f32 %v1228_v44, %v541_v52  ;;  %v543_v54 = vpop.f32.mrb[31].mxu0  ;;  %v559_v57 = vmax.f32 %v539_v50, 0.0  ;;  %v679_v44 = vld [vmem:[%s1281_s3 + $0x10] sm:$0xff] }
 0x145   : > { %v1045_v37 = vpack.c.bf16 %v680_v61, %v679_v44 }
 0x146   : > { %v560_v58 = vmax.f32 %v542_v53, 0.0 }
 0x148   : > { %v1037_v59 = vpack.c.bf16 %v560_v58, %v559_v57 }
 0x14a   : > { %1038 = vmatprep.subr.bf16.mxu1 %v1037_v59 }
 0x14b   : > { %1040 = vmatpush3.bf16.msra.mxu1 %v1037_v59 }
 0x14c   : > { %1042 = vmatprep.subr.bf16.mxu1 %v1041_v60 }
 0x14e   : > { %990 = vmatmul.mubr.msk.f32.vlgmr.msra.gmra.mrb[0].mxu1 %vm585_vm8, %v1112_v41 }
 0x14f   : > { %992 = vmatprep.mubr.msk.f32.mxu1 %vm586_vm9, %v1112_v41  ;;  %1044 = vmatpush3.bf16.msra.mxu1 %v1041_v60 }
 0x150   : > { %1046 = vmatprep.subr.bf16.mxu1 %v1045_v37 }
 0x152   : > { %993 = vmatmul.mubr.msk.f32.gmra.mrb[2].mxu1 %vm587_vm12, %v1112_v41 }
 0x153   : > { %1048 = vmatpush3.bf16.msra.mxu1 %v1045_v37 }
 0x221   : > { %v991_v42 = vpop.f32.mrb[0].mxu1 }
 0x222   : > { %v658_v62 = vpop.f32.mrb[1].mxu1 }
 0x223   : > { %1003 = vmatprep.mubr.msk.f32.mxu1 %vm688_vm13, %v658_v62 }
 0x224   : > { %1004 = vmatmul.mubr.msk.f32.vlgmr.msra.gmra.mrb[4].mxu1 %vm688_vm13, %v991_v42 }
 0x225   : > { %v994_v63 = vpop.f32.mrb[2].mxu1 }
 0x226   : > { %v668_v0 = vpop.f32.mrb[3].mxu1 }
 0x227   : > { %1006 = vmatprep.mubr.msk.f32.mxu1 %vm688_vm13, %v668_v0 }
 0x228   : > { %1007 = vmatmul.mubr.msk.f32.gmra.mrb[6].mxu1 %vm688_vm13, %v994_v63 }
 0x2f7   : > { %v1005_v1 = vpop.f32.mrb[4].mxu1 }
 0x2f8   : > { %v767_v2 = vpop.f32.mrb[5].mxu1  ;;  %v773_v4 = vadd.f32 %v1005_v1, %v921_v43 }
 0x2f9   : > { %v768_v3 = vadd.f32 %v921_v43, %v767_v2 }
 0x2fa   : > { %v787_v10 = vmul.f32 %v773_v4, %v773_v4 }
 0x2fb   : > { %v1008_v41 = vpop.f32.mrb[6].mxu1  ;;  %v786_v5 = vmul.f32 %v768_v3, %v768_v3 }
 0x2fc   : > { %v777_v6 = vpop.f32.mrb[7].mxu1  ;;  %v783_v8 = vadd.f32 %v1008_v41, %v921_v43 }
 0x2fd   : > { %v778_v7 = vadd.f32 %v921_v43, %v777_v6  ;;  %790 = vadd.xlane.f32.xlu0 %v786_v5 }
 0x2fe   : > { %v789_v11 = vmul.f32 %v783_v8, %v783_v8 }
 0x2ff   : > { %v788_v9 = vmul.f32 %v778_v7, %v778_v7 }
 0x301   : > { %794 = vadd.xlane.f32.xlu1 %v788_v9  ;;  %792 = vadd.xlane.f32.xlu0 %v787_v10 }
 0x305   : > { %796 = vadd.xlane.f32.xlu1 %v789_v11 }
 0x38a   : > { %v791_v12 = vpop.xlane.xlu0 %790 }
 0x38b   : > { %v798_v13 = vmax.f32 %v791_v12, 1e-24 }
 0x38d   : > { %1095 = vrsqrt.f32 %v798_v13 }
 0x38e   : > { %v795_v14 = vpop.xlane.xlu1 %794  ;;  %v793_v15 = vpop.xlane.xlu0 %792 }
 0x38f   : > { %v800_v16 = vmax.f32 %v795_v14, 1e-24  ;;  %v799_v17 = vmax.f32 %v793_v15, 1e-24 }
 0x391   : > { %1097 = vrsqrt.f32 %v800_v16 }
 0x392   : > { %1099 = vrsqrt.f32 %v799_v17  ;;  %v797_v18 = vpop.xlane.xlu1 %796 }
 0x393   : > { %v801_v19 = vmax.f32 %v797_v18, 1e-24 }
 0x395   : > { %1101 = vrsqrt.f32 %v801_v19 }
 0x397   : > { %v1096_v20 = vpop.eup %1095 }
 0x398   : > { %v806_v21 = vmul.f32 %v1096_v20, %v768_v3 }
 0x39a   : > { %810 = vst [vmem:[%s229_s19] sm:$0xff] %v806_v21 }
 0x39b   : > { %v1098_v22 = vpop.eup %1097 }
 0x39c   : > { %v1100_v23 = vpop.eup %1099  ;;  %v808_v24 = vmul.f32 %v1098_v22, %v778_v7 }
 0x39d   : > { %v807_v25 = vmul.f32 %v1100_v23, %v773_v4 }
 0x39e   : > { %812 = vst [vmem:[%s229_s19 + $0x10] sm:$0xff] %v808_v24 }
 0x39f   : > { %v1102_v26 = vpop.eup %1101  ;;  %811 = vst [vmem:[%s229_s19 + $0x8] sm:$0xff] %v807_v25 }
 0x3a0   : > { %v809_v27 = vmul.f32 %v1102_v26, %v783_v8 }
 0x3a2   : > { %813 = vst [vmem:[%s229_s19 + $0x18] sm:$0xff] %v809_v27 }
 0x3a3 PF: > { %s15_s18 = sadd.s32 1, %s1109_s18  }
 0x3a4   : > { %p12_p5 = scmp.ge.s32.totalorder %s15_s18, 4  }
 0x3a6   :  { %14 = sbr.rel (!%p12_p5) target bundleno = 1 (0x1), region = 70 }

// kernel: crw_forward.3
= control target key start
LH: loop header
LB: loop body
LE: loop exit
PB: predicated region body
PF: predicated region fallthrough
CT: control target
= control target key end

     0   :  { %s1317_s9 = smov 0   ;;  %s1403_s0 = inlined_call_operand.vmem [shape: f32[2,4,8,128], index: 0, kind: input, shape index: {}]   ;;  %s1404_s1 = inlined_call_operand.vmem [shape: f32[2,1,2], index: 1, kind: output, shape index: {0}]   ;;  %s1405_s2 = inlined_call_operand.vmem [shape: f32[2,1,2], index: 2, kind: output, shape index: {1}]  }
   0x1 LB: > { %s1161_s10 = sadd.s32 4294967295, %s1298_s9   ;;  %p1165_p0 = scmp.ge.s32.totalorder %s1298_s9, 1  ;;  %s1298_s9 = sphi %s1317_s9, %s13_s9  }
   0x2   : > { %p115_p1 = scmp.lt.s32.totalorder %s1298_s9, 3 }
   0x4   : > { %p116_p2 = pnand %p1165_p0, %p115_p1 }
   0x5   : > { %p138_p3 = scmp.lt.s32.totalorder (!%p116_p2), %s1161_s10, 1  ;;  %v1300_v0 = vmov (!%p116_p2), 0.0   ;;  %vm1301_vm0 = vmmov (!%p116_p2), 0   ;;  %vm234_vm1 = vcmask (!%p116_p2), 64512   ;;  %vm1083_vm9 = vcmask (!%p116_p2), 7168  }
   0x6   : > { %119 = sbr.rel (%p116_p2) target bundleno = 1922 (0x782), region = 24  ;;  %1201 = vmatprep.subr.mxu0 (!%p116_p2), %v1300_v0  ;;  %1206 = vmatprep.subr.mxu1 (!%p116_p2), %v1300_v0  ;;  %vm1085_vm10 = vcmask (!%p116_p2), 8192  }
   0x7   : > { %1203 = vmatprep.mubr.msk.f32.mxu0 (!%p116_p2), %vm1301_vm0, %v1300_v0  ;;  %1208 = vmatprep.mubr.msk.f32.mxu1 (!%p116_p2), %vm1301_vm0, %v1300_v0 }
   0xd   : > { %s1407_s10 = smov (!%p138_p3, %s1161_s10), 1 }
   0xe   : > { %s1182_s11 = sshll.u32 %s1407_s10, 5  ;;  %s145_s17 = scalar_lea.vmem %s1404_s1, %s1407_s10 }
   0xf   : > { %s142_s14 = scalar_lea.vmem %s1403_s0, %s1182_s11  ;;  %s148_s20 = scalar_lea.vmem %s1405_s2, %s1407_s10 }
  0x10   : > { %v1169_v1 = vld [vmem:[%s142_s14 + $0x8] sm:$0xff]  ;;  %v1170_v2 = vld [vmem:[%s142_s14 + $0x10] sm:$0xff]  ;;  %v156_v3 = vld [vmem:[%s142_s14] sm:$0xff] }
  0x11   : > { %1202 = vmatpush3.xpose.msra.mxu0 %v1169_v1  ;;  %1207 = vmatpush3.xpose.msra.mxu1 %v1170_v2  ;;  %v1171_v4 = vld [vmem:[%s142_s14 + $0x18] sm:$0xff] }
  0x12   : > { %1211 = vmatprep.subr.mxu0 %v1300_v0  ;;  %1216 = vmatprep.subr.mxu1 %v1300_v0 }
  0x14   : > { %1204 = vmatmul.mubr.f32.vlgmr.msra.gmra.mrb[0].mxu0 %v156_v3  ;;  %1209 = vmatmul.mubr.f32.vlgmr.msra.gmra.mrb[0].mxu1 %v1169_v1 }
  0x15   : > { %1212 = vmatpush3.xpose.msra.mxu0 %v1171_v4  ;;  %1213 = vmatprep.mubr.msk.f32.mxu0 %vm1301_vm0, %v1300_v0 }
  0x16   : > { %1221 = vmatprep.subr.mxu0 %v1300_v0  ;;  %1218 = vmatprep.mubr.msk.f32.mxu1 %vm1301_vm0, %v1300_v0 }
  0x18   : > { %1214 = vmatmul.mubr.f32.vlgmr.msra.gmra.mrb[2].mxu0 %v1170_v2 }
  0x19   : > { %1223 = vmatprep.mubr.msk.f32.mxu0 %vm1301_vm0, %v1300_v0 }
  0xe7   : > { %v229_v5 = vpop.f32.mrb[0].mxu0  ;;  %v356_v6 = vpop.f32.mrb[0].mxu1 }
  0xe8   : > { %246 = vxpose.xlu0.b32.start.end [1/1] (short) (narrow) %v229_v5, 8  ;;  %v1205_v7 = vpop.f32.mrb[1].mxu0  ;;  %v360_v8 = vmul.f32 14.285714, %v356_v6  ;;  %v1210_v9 = vpop.f32.mrb[1].mxu1 }
  0xe9   : > { %v233_v15 = vmul.f32 14.285714, %v229_v5 }
  0xea   : > { %v361_v10 = vsel %vm234_vm1, %v360_v8, -inf }
  0xeb   : > { %362 = vmax.xlane.f32.xlu1 %v361_v10  ;;  %v482_v11 = vpop.f32.mrb[2].mxu0  ;;  %v235_v21 = vsel %vm234_vm1, %v233_v15, -inf }
  0xec   : > { %372 = vxpose.xlu0.b32.start.end [1/1] (short) (narrow) %v356_v6, 8  ;;  %v1215_v12 = vpop.f32.mrb[3].mxu0  ;;  %v486_v19 = vmul.f32 14.285714, %v482_v11 }
  0xee   : > { %v487_v22 = vsel %vm234_vm1, %v486_v19, -inf }
 0x168   : > { %v262_v13 = vpop.trf.xlu0 }
 0x169   : > { %v278_v14 = vmul.f32 14.285714, %v262_v13 }
 0x16b   : > { %v279_v16 = vsel %vm234_vm1, %v278_v14, -inf }
 0x16c   : > { %280 = vmax.xlane.f32.xlu1 %v279_v16  ;;  %v388_v17 = vpop.trf.xlu0 }
 0x16d   : > { %v404_v18 = vmul.f32 14.285714, %v388_v17 }
 0x16f   : > { %v405_v20 = vsel %vm234_vm1, %v404_v18, -inf }
 0x170   : > { %406 = vmax.xlane.f32.xlu0 %v405_v20  ;;  %236 = vmax.xlane.f32.xlu1 %v235_v21 }
 0x174   : > { %488 = vmax.xlane.f32.xlu0 %v487_v22 }
 0x178   : > { %v363_v23 = vpop.xlane.xlu1 %362 }
 0x179   : > { %v364_v24 = vsub.f32 %v360_v8, %v363_v23 }
 0x17b   : > { %v365_v25 = vmul.f32 1.442695, %v364_v24 }
 0x17d   : > { %1256 = vpow2.f32 %v365_v25 }
 0x187   : > { %v1257_v26 = vpop.eup %1256 }
 0x188   : > { %v367_v27 = vsel %vm234_vm1, %v1257_v26, 0.0 }
 0x189   : > { %368 = vadd.xlane.f32.xlu1 %v367_v27 }
 0x1f9   : > { %v281_v28 = vpop.xlane.xlu1 %280 }
 0x1fa   : > { %v282_v29 = vsub.f32 %v278_v14, %v281_v28 }
 0x1fc   : > { %v283_v30 = vmul.f32 1.442695, %v282_v29 }
 0x1fd   : > { %v407_v31 = vpop.xlane.xlu0 %406  ;;  %v237_v32 = vpop.xlane.xlu1 %236 }
 0x1fe   : > { %1258 = vpow2.f32 %v283_v30  ;;  %v408_v33 = vsub.f32 %v404_v18, %v407_v31  ;;  %v238_v34 = vsub.f32 %v233_v15, %v237_v32  ;;  %v149_v30 = vlaneseq }
 0x200   : > { %v409_v35 = vmul.f32 1.442695, %v408_v33  ;;  %v239_v36 = vmul.f32 1.442695, %v238_v34  ;;  %v152_v32 = vand.u32 127, %v149_v30 }
 0x201   : > { %v489_v55 = vpop.xlane.xlu0 %488 }
 0x202   : > { %1260 = vpow2.f32 %v409_v35  ;;  %v490_v56 = vsub.f32 %v486_v19, %v489_v55 }
 0x203   : > { %1262 = vpow2.f32 %v239_v36 }
 0x204   : > { %v491_v57 = vmul.f32 1.442695, %v490_v56 }
 0x208   : > { %v1259_v37 = vpop.eup %1258 }
 0x209   : > { %v285_v38 = vsel %vm234_vm1, %v1259_v37, 0.0 }
 0x20a   : > { %286 = vadd.xlane.f32.xlu1 %v285_v38 }
 0x20c   : > { %v1261_v39 = vpop.eup %1260 }
 0x20d   : > { %v411_v40 = vsel %vm234_vm1, %v1261_v39, 0.0  ;;  %v1263_v41 = vpop.eup %1262 }
 0x20e   : > { %412 = vadd.xlane.f32.xlu1 %v411_v40  ;;  %v241_v42 = vsel %vm234_vm1, %v1263_v41, 0.0 }
 0x212   : > { %242 = vadd.xlane.f32.xlu1 %v241_v42 }
 0x216   : > { %v369_v43 = vpop.xlane.xlu1 %368 }
 0x217   : > { %1264 = vrcp.f32 %v369_v43 }
 0x221   : > { %v1265_v44 = vpop.eup %1264 }
 0x222   : > { %v371_v45 = vmul.f32 %v1265_v44, %v1257_v26 }
 0x224   : > { %1217 = vmatpush3.msra.mxu1 %v371_v45 }
 0x225   : > { %1226 = vmatprep.subr.mxu1 %v1300_v0 }
 0x245   : > { %498 = vxpose.xlu1.b32.start.end [1/1] (short) (narrow) %v482_v11, 8 }
 0x297   : > { %v287_v46 = vpop.xlane.xlu1 %286 }
 0x298   : > { %1266 = vrcp.f32 %v287_v46 }
 0x29b   : > { %v413_v47 = vpop.xlane.xlu1 %412 }
 0x29c   : > { %1268 = vrcp.f32 %v413_v47 }
 0x29f   : > { %v243_v48 = vpop.xlane.xlu1 %242 }
 0x2a0   : > { %1270 = vrcp.f32 %v243_v48 }
 0x2a1   : > { %1272 = vpow2.f32 %v491_v57 }
 0x2a2   : > { %v1267_v49 = vpop.eup %1266 }
 0x2a3   : > { %v289_v50 = vmul.f32 %v1267_v49, %v1259_v37  ;;  %v150_v49 = vshrl.u32 %v149_v30, 7 }
 0x2a5   : > { %1222 = vmatpush3.msra.mxu0 %v289_v50  ;;  %vm153_vm4 = vcmp.eq.s32.totalorder %v150_v49, %v152_v32 }
 0x2a6   : > { %v1269_v51 = vpop.eup %1268  ;;  %1231 = vmatprep.subr.mxu0 %v1300_v0 }
 0x2a7   : > { %v415_v52 = vmul.f32 %v1269_v51, %v1261_v39 }
 0x2a9   : > { %1224 = vmatmul.mubr.msk.f32.vlgmr.msra.gmra.mrb[4].mxu0 %vm234_vm1, %v415_v52 }
 0x2aa   : > { %v1271_v53 = vpop.eup %1270  ;;  %1233 = vmatprep.mubr.msk.f32.mxu0 %vm1301_vm0, %v1300_v0 }
 0x2ab   : > { %v245_v54 = vmul.f32 %v1271_v53, %v1263_v41  ;;  %v1273_v61 = vpop.eup %1272 }
 0x2ac   : > { %v493_v62 = vsel %vm234_vm1, %v1273_v61, 0.0 }
 0x2ad   : > { %1219 = vmatmul.mubr.msk.f32.vlgmr.msra.gmra.mrb[2].mxu1 %vm234_vm1, %v245_v54  ;;  %v1168_v54 = vsel %vm153_vm4, 1.0, %v1300_v0 }
 0x2ae   : > { %1228 = vmatprep.mubr.msk.f32.mxu1 %vm1301_vm0, %v1300_v0 }
 0x2c5   : > { %v514_v58 = vpop.trf.xlu1 }
 0x2c6   : > { %v530_v59 = vmul.f32 14.285714, %v514_v58 }
 0x2c8   : > { %v531_v60 = vsel %vm234_vm1, %v530_v59, -inf }
 0x2c9   : > { %532 = vmax.xlane.f32.xlu0 %v531_v60 }
 0x2cd   : > { %494 = vadd.xlane.f32.xlu0 %v493_v62 }
 0x356   : > { %v533_v63 = vpop.xlane.xlu0 %532 }
 0x357   : > { %v534_v1 = vsub.f32 %v530_v59, %v533_v63 }
 0x359   : > { %v535_v2 = vmul.f32 1.442695, %v534_v1 }
 0x35a   : > { %v495_v3 = vpop.xlane.xlu0 %494 }
 0x35b   : > { %1274 = vpow2.f32 %v535_v2 }
 0x35c   : > { %1276 = vrcp.f32 %v495_v3 }
 0x365   : > { %v1275_v4 = vpop.eup %1274 }
 0x366   : > { %v1277_v5 = vpop.eup %1276  ;;  %v537_v6 = vsel %vm234_vm1, %v1275_v4, 0.0 }
 0x367   : > { %538 = vadd.xlane.f32.xlu0 %v537_v6  ;;  %v497_v7 = vmul.f32 %v1277_v5, %v1273_v61 }
 0x369   : > { %1232 = vmatpush3.msra.mxu0 %v497_v7 }
 0x36a   : > { %1241 = vmatprep.subr.mxu0 %v1300_v0 }
 0x37c   : > { %v684_v8 = vpop.f32.mrb[4].mxu0 }
 0x37d   : > { %v1225_v9 = vpop.f32.mrb[5].mxu0  ;;  %1227 = vmatpush3.msra.mxu1 %v684_v8 }
 0x37e   : > { %1236 = vmatprep.subr.mxu1 %v1300_v0 }
 0x380   : > { %v611_v10 = vpop.f32.mrb[2].mxu1 }
 0x381   : > { %v1220_v11 = vpop.f32.mrb[3].mxu1  ;;  %1229 = vmatmul.mubr.msk.f32.vlgmr.msra.gmra.mrb[4].mxu1 %vm234_vm1, %v611_v10  ;;  %1234 = vmatmul.mubr.msk.f32.vlgmr.msra.gmra.mrb[6].mxu0 %vm234_vm1, %v611_v10 }
 0x382   : > { %1237 = vmatpush3.msra.mxu1 %v684_v8  ;;  %1238 = vmatprep.mubr.msk.f32.mxu1 %vm1301_vm0, %v1300_v0 }
 0x383   : > { %1243 = vmatprep.mubr.msk.f32.mxu0 %vm1301_vm0, %v1300_v0 }
 0x3f4   : > { %v539_v12 = vpop.xlane.xlu0 %538 }
 0x3f5   : > { %1278 = vrcp.f32 %v539_v12 }
 0x3ff   : > { %v1279_v13 = vpop.eup %1278 }
 0x400   : > { %v541_v14 = vmul.f32 %v1279_v13, %v1275_v4 }
 0x402   : > { %1239 = vmatmul.mubr.msk.f32.vlgmr.msra.gmra.mrb[6].mxu1 %vm234_vm1, %v541_v14 }
 0x454   : > { %v757_v15 = vpop.f32.mrb[4].mxu1  ;;  %v880_v16 = vpop.f32.mrb[6].mxu0 }
 0x455   : > { %v758_v17 = vadd.f32 1e-20, %v757_v15  ;;  %v1230_v18 = vpop.f32.mrb[5].mxu1  ;;  %v1235_v19 = vpop.f32.mrb[7].mxu0 }
 0x457   : > { %1280 = vlog2.f32 %v758_v17 }
 0x461   : > { %v1281_v20 = vpop.eup %1280 }
 0x462   : > { %v762_v21 = vmul.f32 0.6931472, %v1281_v20 }
 0x464   : > { %v763_v22 = vsel %vm234_vm1, %v762_v21, -inf  ;;  %v775_v57 = vmul.f32 %v1168_v54, %v762_v21 }
 0x465   : > { %764 = vmax.xlane.f32.xlu0 %v763_v22 }
 0x466   : > { %v776_v58 = vsel %vm234_vm1, %v775_v57, 0.0 }
 0x4d5   : > { %v953_v23 = vpop.f32.mrb[6].mxu1 }
 0x4d6   : > { %v1240_v24 = vpop.f32.mrb[7].mxu1  ;;  %1242 = vmatpush3.msra.mxu0 %v953_v23 }
 0x4d7   : > { %1244 = vmatmul.mubr.msk.f32.vlgmr.msra.gmra.mrb[8].mxu0 %vm234_vm1, %v880_v16 }
 0x4f2   : > { %v1377_v25 = vpop.xlane.xlu0 %764 }
 0x4f3   : > { %v766_v29 = vsub.f32 %v762_v21, %v1377_v25  ;;  %vm780_vm2 = vcmp.ge.f32.partialorder %v762_v21, %v1377_v25 }
 0x4f4   : > { %v781_v33 = vsel %vm780_vm2, %v152_v32, 8 }
 0x4f5   : > { %v767_v31 = vmul.f32 1.442695, %v766_v29  ;;  %v782_v34 = vsel %vm234_vm1, %v781_v33, 2147483647 }
 0x4f6   : > { %v784_v37 = vshra.s32 %v782_v34, 16  ;;  %v783_v51 = vand.u32 65535, %v782_v34 }
 0x4f8   : > { %v786_v39 = vcvt.s32.f32 %v784_v37  ;;  %v785_v55 = vcvt.s32.f32 %v783_v51 }
 0x5aa   : > { %v1026_v26 = vpop.f32.mrb[8].mxu0 }
 0x5ab   : > { %v1027_v27 = vadd.f32 1e-20, %v1026_v26  ;;  %v1245_v28 = vpop.f32.mrb[9].mxu0 }
 0x5ad   : > { %1282 = vlog2.f32 %v1027_v27 }
 0x5ae   : > { %1284 = vpow2.f32 %v767_v31 }
 0x5b7   : > { %v1283_v35 = vpop.eup %1282 }
 0x5b8   : > { %v1031_v36 = vmul.f32 0.6931472, %v1283_v35  ;;  %v1285_v40 = vpop.eup %1284 }
 0x5b9   : > { %v769_v41 = vsel %vm234_vm1, %v1285_v40, 0.0 }
 0x5ba   : > { %v1032_v38 = vsel %vm234_vm1, %v1031_v36, -inf  ;;  %v1044_v63 = vmul.f32 %v1168_v54, %v1031_v36 }
 0x5bb   : > { %1033 = vmax.xlane.f32.xlu0 %v1032_v38 }
 0x5bc   : > { %v1045_v1 = vsel %vm234_vm1, %v1044_v63, 0.0 }
 0x5bf   : > { %787 = vmin.xlane.f32.xlu0 %v786_v39 }
 0x5c3   : > { %770 = vadd.xlane.f32.xlu0 %v769_v41 }
 0x648   : > { %v1034_v42 = vpop.xlane.xlu0 %1033 }
 0x649   : > { %v1035_v43 = vsub.f32 %v1031_v36, %v1034_v42  ;;  %vm1049_vm3 = vcmp.ge.f32.partialorder %v1031_v36, %v1034_v42 }
 0x64a   : > { %v1050_v44 = vsel %vm1049_vm3, %v152_v32, 8 }
 0x64b   : > { %v1036_v45 = vmul.f32 1.442695, %v1035_v43  ;;  %v1051_v46 = vsel %vm234_vm1, %v1050_v44, 2147483647 }
 0x64c   : > { %v1053_v47 = vshra.s32 %v1051_v46, 16  ;;  %v788_v50 = vpop.xlane.xlu0 %787  ;;  %v1052_v59 = vand.u32 65535, %v1051_v46 }
 0x64d   : > { %1286 = vpow2.f32 %v1036_v45  ;;  %vm789_vm5 = vcmp.eq.f32.partialorder %v786_v39, %v788_v50  ;;  %v794_v5 = vcvt.f32.s32 %v788_v50 }
 0x64e   : > { %v1055_v48 = vcvt.s32.f32 %v1053_v47  ;;  %v790_v56 = vsel %vm789_vm5, %v785_v55, inf  ;;  %v1054_v61 = vcvt.s32.f32 %v1052_v59 }
 0x64f   : > { %v795_v8 = vshll.u32 %v794_v5, 16 }
 0x650   : > { %1056 = vmin.xlane.f32.xlu1 %v1055_v48  ;;  %v771_v2 = vpop.xlane.xlu0 %770 }
 0x651   : > { %1288 = vlog2.f32 %v771_v2 }
 0x657   : > { %v1287_v52 = vpop.eup %1286 }
 0x658   : > { %v1038_v53 = vsel %vm234_vm1, %v1287_v52, 0.0 }
 0x659   : > { %1039 = vadd.xlane.f32.xlu0 %v1038_v53 }
 0x65b   : > { %v1289_v7 = vpop.eup %1288 }
 0x65c   : > { %v773_v10 = vmul.f32 0.6931472, %v1289_v7 }
 0x65d   : > { %791 = vmin.xlane.f32.xlu0 %v790_v56 }
 0x65e   : > { %v774_v12 = vadd.f32 %v773_v10, %v1377_v25 }
 0x661   : > { %777 = vadd.xlane.f32.xlu0 %v776_v58 }
 0x6dd   : > { %v1057_v60 = vpop.xlane.xlu1 %1056 }
 0x6de   : > { %vm1058_vm6 = vcmp.eq.f32.partialorder %v1055_v48, %v1057_v60  ;;  %v1063_v17 = vcvt.f32.s32 %v1057_v60 }
 0x6df   : > { %v1059_v62 = vsel %vm1058_vm6, %v1054_v61, inf }
 0x6e0   : > { %1060 = vmin.xlane.f32.xlu0 %v1059_v62  ;;  %v1064_v22 = vshll.u32 %v1063_v17, 16 }
 0x6e4   : > { %1046 = vadd.xlane.f32.xlu0 %v1045_v1 }
 0x6e6   : > { %v1040_v3 = vpop.xlane.xlu0 %1039 }
 0x6e7   : > { %1290 = vlog2.f32 %v1040_v3 }
 0x6ea   : > { %v792_v4 = vpop.xlane.xlu0 %791 }
 0x6eb   : > { %v793_v6 = vcvt.f32.s32 %v792_v4 }
 0x6ed   : > { %v796_v9 = vadd.s32 %v795_v8, %v793_v6 }
 0x6ee   : > { %v778_v11 = vpop.xlane.xlu0 %777 }
 0x6ef   : > { %vm797_vm7 = vcmp.eq.s32.totalorder %v796_v9, %v150_v49  ;;  %v779_v14 = vsub.f32 %v774_v12, %v778_v11 }
 0x6f0   : > { %v1175_v13 = vsel %vm797_vm7, 1.0, %v1300_v0 }
 0x6f1   : > { %v1291_v15 = vpop.eup %1290  ;;  %v807_v16 = vrot.slane %v1175_v13, 4  ;;  %v800_v18 = vrot.slane %v779_v14, 4 }
 0x6f2   : > { %v1042_v19 = vmul.f32 0.6931472, %v1291_v15 }
 0x6f3   : > { %v808_v20 = vadd.f32 %v1175_v13, %v807_v16  ;;  %v801_v23 = vadd.f32 %v800_v18, %v779_v14 }
 0x6f4   : > { %v1043_v27 = vadd.f32 %v1042_v19, %v1034_v42 }
 0x6f5   : > { %v809_v28 = vrot.slane %v808_v20, 2  ;;  %v802_v30 = vrot.slane %v801_v23, 2 }
 0x6f7   : > { %v810_v34 = vadd.f32 %v809_v28, %v808_v20  ;;  %v803_v35 = vadd.f32 %v802_v30, %v801_v23 }
 0x6f9   : > { %v811_v40 = vrot.slane %v810_v34, 1  ;;  %v804_v41 = vrot.slane %v803_v35, 1 }
 0x6fb   : > { %v812_v46 = vadd.f32 %v811_v40, %v810_v34 }
 0x76d   : > { %v1061_v21 = vpop.xlane.xlu0 %1060 }
 0x76e   : > { %v1062_v24 = vcvt.f32.s32 %v1061_v21 }
 0x770   : > { %v1065_v26 = vadd.s32 %v1064_v22, %v1062_v24 }
 0x771   : > { %v1047_v29 = vpop.xlane.xlu0 %1046 }
 0x772   : > { %vm1066_vm8 = vcmp.eq.s32.totalorder %v1065_v26, %v150_v49  ;;  %v1048_v25 = vsub.f32 %v1043_v27, %v1047_v29 }
 0x773   : > { %v1179_v31 = vsel %vm1066_vm8, 1.0, %v1300_v0  ;;  %v805_v0 = vadd.f32 %v804_v41, %v803_v35 }
 0x774   : > { %v1076_v32 = vrot.slane %v1179_v31, 4  ;;  %v1069_v33 = vrot.slane %v1048_v25, 4 }
 0x776   : > { %v1077_v36 = vadd.f32 %v1179_v31, %v1076_v32  ;;  %v1070_v37 = vadd.f32 %v1069_v33, %v1048_v25 }
 0x778   : > { %v1078_v38 = vrot.slane %v1077_v36, 2  ;;  %v1071_v39 = vrot.slane %v1070_v37, 2 }
 0x77a   : > { %v1079_v42 = vadd.f32 %v1078_v38, %v1077_v36  ;;  %v1072_v43 = vadd.f32 %v1071_v39, %v1070_v37 }
 0x77c   : > { %v1080_v44 = vrot.slane %v1079_v42, 1  ;;  %v1073_v45 = vrot.slane %v1072_v43, 1 }
 0x77e   : > { %v1081_v47 = vadd.f32 %v1080_v44, %v1079_v42  ;;  %v1074_v48 = vadd.f32 %v1073_v45, %v1072_v43 }
 0x780   : > { %v1087_v49 = vsel %vm1083_vm9, %v812_v46, %v1081_v47  ;;  %v1084_v50 = vsel %vm1083_vm9, %v805_v0, %v1074_v48 }
 0x781   : > { %1088 = vst.msk [vmem:[%s148_s20] sm:$0x1] %vm1085_vm10, %v1087_v49  ;;  %1086 = vst.msk [vmem:[%s145_s17] sm:$0x1] %vm1085_vm10, %v1084_v50 }
 0x782 PF: > { %s13_s9 = sadd.s32 1, %s1298_s9  }
 0x783   : > { %p10_p4 = scmp.ge.s32.totalorder %s13_s9, 4  }
 0x785   :  { %12 = sbr.rel (!%p10_p4) target bundleno = 1 (0x1), region = 69 }

</bundles_post_ra>
